<compile_context>
chip_gen: v7x
topology: tpu7x:2x2x1
jax: 0.10.0
libtpu: 0.0.40
codegen_flags: <defaults>
</compile_context>

<pallas_src>
import functools

import jax
import jax.numpy as jnp
from jax.experimental import pallas as pl
from jax.experimental.pallas import tpu as pltpu


# ---------------------------------------------------------------------------
# Packed-weight layout (static function of n_layers / E / H)
# ---------------------------------------------------------------------------

def _round_up(v, m):
    return ((v + m - 1) // m) * m


def _pack_layout(n_layers, E, H):
    """Row offsets for the single packed (rows, 4H) weight array."""
    layers = []
    r = 0
    for layer in range(n_layers):
        d_in = E if layer == 0 else H
        wih_off = r
        r += _round_up(d_in, 8)
        whh_off = r
        r += _round_up(H, 8)
        b_off = r
        r += 8
        layers.append((wih_off, d_in, whh_off, b_off))
    fc_off = r
    r += 8
    return layers, fc_off, r


# ---------------------------------------------------------------------------
# Fused Pallas kernel
# ---------------------------------------------------------------------------

def _ltlnet_fused_kernel(n_layers, T, BP, E, H, layout, fc_off,
                         x_ref, h0_ref, c0_ref, w_ref,
                         out_ref, hn_ref, cn_ref, g0_scr):
    """Fused LTLNet forward.

    x_ref : (T*BP, E)  time-major, batch padded to BP (multiple of 8)
    h0_ref, c0_ref : (L, BP, H)
    w_ref : (rows, 4H)  packed weights (g-gate columns pre-scaled by 2)
    out_ref : (BP, 1);  hn_ref, cn_ref : (L, BP, H)
    g0_scr : (T*BP, 4H) hoisted layer-0 input projection
    """
    # --- prologue: load all (tiny) weights once as SSA values -------------
    wih, whh, bias = [], [], []
    for layer in range(n_layers):
        wih_off, d_in, whh_off, b_off = layout[layer]
        wih.append(w_ref[wih_off:wih_off + d_in, :])      # (d_in, 4H)
        whh.append(w_ref[whh_off:whh_off + H, :])         # (H, 4H)
        bias.append(w_ref[b_off:b_off + 1, :])            # (1, 4H)

    # Hoisted layer-0 input projection for all T steps: one MXU matmul.
    g0_scr[...] = (
        jnp.dot(x_ref[...], wih[0], preferred_element_type=jnp.float32)
        + bias[0]
    )

    h_st = [h0_ref[layer] for layer in range(n_layers)]   # (BP, H) each
    c_st = [c0_ref[layer] for layer in range(n_layers)]

    def lstm_step(layer, pre):
        # pre = x-projection + bias for this step; add recurrent projection.
        gates = pre + jnp.dot(h_st[layer], whh[layer],
                              preferred_element_type=jnp.float32)   # (BP, 4H)
        # Single sigmoid pass: g-gate columns were pre-scaled by 2 at init,
        # so tanh(z_g) = 2*sigmoid(2*z_g) - 1 = 2*sig[:, 2H:3H] - 1.
        sig = jax.nn.sigmoid(gates)
        i_g = sig[:, 0:H]
        f_g = sig[:, H:2 * H]
        g_g = 2.0 * sig[:, 2 * H:3 * H] - 1.0
        o_g = sig[:, 3 * H:4 * H]
        c_st[layer] = f_g * c_st[layer] + i_g * g_g
        h_st[layer] = o_g * jnp.tanh(c_st[layer])
        return h_st[layer]

    # --- wavefront recurrence ---------------------------------------------
    # At slot s, layer l runs its step t = s - l; adjacent layers' steps are
    # independent straight-line SSA, so the scheduler overlaps their MXU/EUP work.
    pending = [None] * n_layers      # pending[l] = h from layer l-1 awaiting layer l
    for s in range(T + n_layers - 1):
        produced = [None] * n_layers
        for layer in range(n_layers):
            t = s - layer
            if 0 <= t < T:
                if layer == 0:
                    pre = g0_scr[t * BP:(t + 1) * BP, :]
                else:
                    # Per-step projection of the lower layer's h (carried as SSA).
                    pre = jnp.dot(pending[layer], wih[layer],
                                  preferred_element_type=jnp.float32) + bias[layer]
                produced[layer] = lstm_step(layer, pre)
        for layer in range(1, n_layers):
            if produced[layer - 1] is not None:
                pending[layer] = produced[layer - 1]

    # --- epilogue ------------------------------------------------------------
    for layer in range(n_layers):
        hn_ref[layer] = h_st[layer]
        cn_ref[layer] = c_st[layer]

    # fc (output_size == 1) + sigmoid on the last top-layer step:
    # VPU multiply + lane reduction (no degenerate N=1 MXU matmul).
    w_fc = w_ref[fc_off:fc_off + 1, 0:H]                  # (1, H)
    b_fc = w_ref[fc_off + 1:fc_off + 2, 0:1]              # (1, 1)
    z = jnp.sum(h_st[-1] * w_fc, axis=-1, keepdims=True) + b_fc
    out_ref[...] = jax.nn.sigmoid(z)


# ---------------------------------------------------------------------------
# Wrapper
# ---------------------------------------------------------------------------

def _vmem():
    return pl.BlockSpec(memory_space=pltpu.MemorySpace.VMEM)


@jax.jit
def ltlnet_forward(params, x, hidden, lens):
    """Forward pass of LTLNet (eval mode).

    x      : (B, T, embedding_dim) float32 (batch_first, like PyTorch)
    hidden : (h0, c0) each (n_layers, B, hidden_dim)
    lens   : unused (the PyTorch reference forward also ignores it)

    Returns (out: (B,), (h_n, c_n))
    """
    del lens
    h0, c0 = hidden
    n_layers, B, H = h0.shape
    _, T, E = x.shape
    G = 4 * H
    BP = max(8, _round_up(B, 8))           # 8-sublane aligned batch
    pad_b = BP - B

    layout, fc_off, _ = _pack_layout(n_layers, E, H)

    # Time-major + batch padding done by XLA outside the kernel (a few KiB, noise),
    # so every per-step tile inside the recurrence is sublane-aligned.
    x_tm = jnp.transpose(x.astype(jnp.float32), (1, 0, 2))          # (T, B, E)
    x2d = jnp.pad(x_tm, ((0, 0), (0, pad_b), (0, 0))).reshape(T * BP, E)
    h0p = jnp.pad(h0.astype(jnp.float32), ((0, 0), (0, pad_b), (0, 0)))
    c0p = jnp.pad(c0.astype(jnp.float32), ((0, 0), (0, pad_b), (0, 0)))

    kernel = functools.partial(
        _ltlnet_fused_kernel, n_layers, T, BP, E, H, layout, fc_off)

    out, h_n, c_n = pl.pallas_call(
        kernel,
        out_shape=(
            jax.ShapeDtypeStruct((BP, 1), jnp.float32),             # sigmoid(fc(h_last))
            jax.ShapeDtypeStruct((n_layers, BP, H), jnp.float32),   # h_n (padded)
            jax.ShapeDtypeStruct((n_layers, BP, H), jnp.float32),   # c_n (padded)
        ),
        in_specs=[_vmem()] * 4,
        out_specs=(_vmem(), _vmem(), _vmem()),
        scratch_shapes=[
            pltpu.VMEM((T * BP, G), jnp.float32),   # hoisted layer-0 gate projection
        ],
    )(x2d, h0p, c0p, params["packed"])

    return out[:B, 0], (h_n[:, :B, :], c_n[:, :B, :])


# ---------------------------------------------------------------------------
# Parameters (PyTorch-shaped init, packed + pre-transformed for the kernel)
# ---------------------------------------------------------------------------

def init_ltlnet_params(key, output_size, embedding_dim, hidden_dim, n_layers):
    """Uniform(-1/sqrt(H), 1/sqrt(H)) init mirroring PyTorch shapes.

    Returns (params_for_kernel, torch_like_params_for_reference).
    """
    assert output_size == 1, "kernel fc epilogue assumes output_size == 1 (as in the spec)"
    E, H = embedding_dim, hidden_dim
    G = 4 * H
    k = 1.0 / (float(H) ** 0.5)
    keys = jax.random.split(key, n_layers * 4 + 2)
    layout, fc_off, rows = _pack_layout(n_layers, E, H)

    # tanh(x) = 2*sigmoid(2x) - 1  ->  pre-scale the g-gate block by 2 so the kernel
    # needs a single sigmoid pass over the full (BP, 4H) gate tile.
    gate_scale = jnp.ones((G,), jnp.float32).at[2 * H:3 * H].set(2.0)

    packed = jnp.zeros((rows, G), jnp.float32)
    torch_like = {"lstm": [], "fc": {}}
    ki = 0
    for layer in range(n_layers):
        d_in = E if layer == 0 else H
        w_ih = jax.random.uniform(keys[ki], (G, d_in), jnp.float32, -k, k); ki += 1
        w_hh = jax.random.uniform(keys[ki], (G, H), jnp.float32, -k, k); ki += 1
        b_ih = jax.random.uniform(keys[ki], (G,), jnp.float32, -k, k); ki += 1
        b_hh = jax.random.uniform(keys[ki], (G,), jnp.float32, -k, k); ki += 1
        torch_like["lstm"].append(dict(w_ih=w_ih, w_hh=w_hh, b_ih=b_ih, b_hh=b_hh))

        wih_off, _, whh_off, b_off = layout[layer]
        packed = packed.at[wih_off:wih_off + d_in, :].set(jnp.transpose(w_ih) * gate_scale)
        packed = packed.at[whh_off:whh_off + H, :].set(jnp.transpose(w_hh) * gate_scale)
        packed = packed.at[b_off, :].set((b_ih + b_hh) * gate_scale)

    w_fc = jax.random.uniform(keys[ki], (output_size, H), jnp.float32, -k, k); ki += 1
    b_fc = jax.random.uniform(keys[ki], (output_size,), jnp.float32, -k, k); ki += 1
    torch_like["fc"] = dict(w=w_fc, b=b_fc)
    packed = packed.at[fc_off, 0:H].set(w_fc[0])
    packed = packed.at[fc_off + 1, 0].set(b_fc[0])

    return {"packed": packed}, torch_like


# ---------------------------------------------------------------------------
# Pure-JAX reference (eval-mode dropout = identity) for correctness checking
# ---------------------------------------------------------------------------

def ltlnet_reference(tp, x, hidden):
    h0, c0 = hidden
    L, _, H = h0.shape
    T = x.shape[1]
    hp = jax.lax.Precision.HIGHEST
    seq = x
    hs, cs = [], []
    for layer in range(L):
        p = tp["lstm"][layer]
        b = p["b_ih"] + p["b_hh"]
        h, c = h0[layer], c0[layer]
        outs = []
        for t in range(T):
            z = (jnp.dot(seq[:, t, :], p["w_ih"].T, precision=hp)
                 + jnp.dot(h, p["w_hh"].T, precision=hp) + b)
            i = jax.nn.sigmoid(z[:, 0:H])
            f = jax.nn.sigmoid(z[:, H:2 * H])
            g = jnp.tanh(z[:, 2 * H:3 * H])
            o = jax.nn.sigmoid(z[:, 3 * H:4 * H])
            c = f * c + i * g
            h = o * jnp.tanh(c)
            outs.append(h)
        seq = jnp.stack(outs, axis=1)
        hs.append(h)
        cs.append(c)
    out = jax.nn.sigmoid(jnp.dot(seq[:, -1, :], tp["fc"]["w"].T, precision=hp) + tp["fc"]["b"])
    return out[:, 0], (jnp.stack(hs), jnp.stack(cs))


# ---------------------------------------------------------------------------
# main
# ---------------------------------------------------------------------------

if __name__ == "__main__":
    output_size = 1
    embedding_dim = 64
    hidden_dim = 32
    n_layers = 2
    batch = 2
    seq_len = 8

    key = jax.random.PRNGKey(0)
    k_param, k_x = jax.random.split(key)

    params, torch_like = init_ltlnet_params(
        k_param, output_size, embedding_dim, hidden_dim, n_layers)

    x = jax.random.normal(k_x, (batch, seq_len, embedding_dim), dtype=jnp.float32)
    h0 = jnp.zeros((n_layers, batch, hidden_dim), jnp.float32)
    c0 = jnp.zeros((n_layers, batch, hidden_dim), jnp.float32)
    lens = jnp.full((batch,), seq_len, jnp.int32)

    out, (h_n, c_n) = ltlnet_forward(params, x, (h0, c0), lens)
    jax.block_until_ready((out, h_n, c_n))

    assert out.shape == (batch,)
    assert h_n.shape == (n_layers, batch, hidden_dim)
    assert c_n.shape == (n_layers, batch, hidden_dim)

    # Sanity check vs. pure-JAX reference (tolerance covers MXU f32 pass differences
    # and the tanh-via-sigmoid identity rewrite).
    ref_out, (ref_hn, ref_cn) = ltlnet_reference(torch_like, x, (h0, c0))
    assert bool(jnp.allclose(out, ref_out, atol=5e-3)), "out mismatch vs reference"
    assert bool(jnp.allclose(h_n, ref_hn, atol=5e-3)), "h_n mismatch vs reference"
    assert bool(jnp.allclose(c_n, ref_cn, atol=5e-3)), "c_n mismatch vs reference"

    print("KERNEL_OK")
</pallas_src>

<mosaic_0001>
module attributes {stable_mosaic.version = 11 : i64} {
  func.func @_ltlnet_fused_kernel(%arg0: memref<64x64xf32, #tpu.memory_space<vmem>>, %arg1: memref<2x8x32xf32, #tpu.memory_space<vmem>>, %arg2: memref<2x8x32xf32, #tpu.memory_space<vmem>>, %arg3: memref<184x128xf32, #tpu.memory_space<vmem>>, %arg4: memref<8x1xf32, #tpu.memory_space<vmem>>, %arg5: memref<2x8x32xf32, #tpu.memory_space<vmem>>, %arg6: memref<2x8x32xf32, #tpu.memory_space<vmem>>, %arg7: memref<64x128xf32, #tpu.memory_space<vmem>>) attributes {dimension_semantics = [], scalar_prefetch = 0 : i64, scratch_operands = 1 : i64, tpu.core_type = #tpu.core_type<tc>} {
    %c0 = arith.constant 0 : index
    %c0_0 = arith.constant 0 : index
    %0 = vector.load %arg3[%c0, %c0_0] : memref<184x128xf32, #tpu.memory_space<vmem>>, vector<64x128xf32>
    %c64 = arith.constant 64 : index
    %c0_1 = arith.constant 0 : index
    %1 = vector.load %arg3[%c64, %c0_1] : memref<184x128xf32, #tpu.memory_space<vmem>>, vector<32x128xf32>
    %c96 = arith.constant 96 : index
    %c0_2 = arith.constant 0 : index
    %2 = vector.load %arg3[%c96, %c0_2] : memref<184x128xf32, #tpu.memory_space<vmem>>, vector<1x128xf32>
    %c104 = arith.constant 104 : index
    %c0_3 = arith.constant 0 : index
    %3 = vector.load %arg3[%c104, %c0_3] : memref<184x128xf32, #tpu.memory_space<vmem>>, vector<32x128xf32>
    %c136 = arith.constant 136 : index
    %c0_4 = arith.constant 0 : index
    %4 = vector.load %arg3[%c136, %c0_4] : memref<184x128xf32, #tpu.memory_space<vmem>>, vector<32x128xf32>
    %c168 = arith.constant 168 : index
    %c0_5 = arith.constant 0 : index
    %5 = vector.load %arg3[%c168, %c0_5] : memref<184x128xf32, #tpu.memory_space<vmem>>, vector<1x128xf32>
    %c0_6 = arith.constant 0 : index
    %c0_7 = arith.constant 0 : index
    %6 = vector.load %arg0[%c0_6, %c0_7] : memref<64x64xf32, #tpu.memory_space<vmem>>, vector<64x64xf32>
    %cst = arith.constant dense<0.000000e+00> : vector<64x128xf32>
    %7 = tpu.matmul %6, %0, %cst {dimension_numbers = #tpu.dot_dimension_numbers<[1], [0], [0], [1], [0, 0, 1, 1], [], []>} : vector<64x64xf32>, vector<64x128xf32>, vector<64x128xf32> -> vector<64x128xf32>
    %8 = vector.broadcast %2 : vector<1x128xf32> to vector<64x128xf32>
    %9 = arith.addf %7, %8 : vector<64x128xf32>
    %c0_8 = arith.constant 0 : index
    %c0_9 = arith.constant 0 : index
    %10 = vector.load %arg7[%c0_8, %c0_9] : memref<64x128xf32, #tpu.memory_space<vmem>>, vector<64x128xf32>
    tpu.vector_store %arg7[%c0_8, %c0_9], %9 {strides = array<i32>} : memref<64x128xf32, #tpu.memory_space<vmem>>, vector<64x128xf32>,
    %c0_10 = arith.constant 0 : index
    %c0_11 = arith.constant 0 : index
    %c0_12 = arith.constant 0 : index
    %11 = vector.load %arg1[%c0_10, %c0_11, %c0_12] : memref<2x8x32xf32, #tpu.memory_space<vmem>>, vector<1x8x32xf32>
    %12 = vector.shape_cast %11 : vector<1x8x32xf32> to vector<8x32xf32>
    %c1 = arith.constant 1 : index
    %c0_13 = arith.constant 0 : index
    %c0_14 = arith.constant 0 : index
    %13 = vector.load %arg1[%c1, %c0_13, %c0_14] : memref<2x8x32xf32, #tpu.memory_space<vmem>>, vector<1x8x32xf32>
    %14 = vector.shape_cast %13 : vector<1x8x32xf32> to vector<8x32xf32>
    %c0_15 = arith.constant 0 : index
    %c0_16 = arith.constant 0 : index
    %c0_17 = arith.constant 0 : index
    %15 = vector.load %arg2[%c0_15, %c0_16, %c0_17] : memref<2x8x32xf32, #tpu.memory_space<vmem>>, vector<1x8x32xf32>
    %16 = vector.shape_cast %15 : vector<1x8x32xf32> to vector<8x32xf32>
    %c1_18 = arith.constant 1 : index
    %c0_19 = arith.constant 0 : index
    %c0_20 = arith.constant 0 : index
    %17 = vector.load %arg2[%c1_18, %c0_19, %c0_20] : memref<2x8x32xf32, #tpu.memory_space<vmem>>, vector<1x8x32xf32>
    %18 = vector.shape_cast %17 : vector<1x8x32xf32> to vector<8x32xf32>
    %c0_21 = arith.constant 0 : index
    %c0_22 = arith.constant 0 : index
    %19 = vector.load %arg7[%c0_21, %c0_22] : memref<64x128xf32, #tpu.memory_space<vmem>>, vector<8x128xf32>
    %cst_23 = arith.constant dense<0.000000e+00> : vector<8x128xf32>
    %20 = tpu.matmul %12, %1, %cst_23 {dimension_numbers = #tpu.dot_dimension_numbers<[1], [0], [0], [1], [0, 0, 1, 1], [], []>} : vector<8x32xf32>, vector<32x128xf32>, vector<8x128xf32> -> vector<8x128xf32>
    %21 = arith.addf %19, %20 : vector<8x128xf32>
    %22 = arith.negf %21 : vector<8x128xf32>
    %23 = math.exp %22 : vector<8x128xf32>
    %cst_24 = arith.constant 1.000000e+00 : f32
    %24 = vector.broadcast %cst_24 : f32 to vector<8x128xf32>
    %25 = arith.addf %24, %23 : vector<8x128xf32>
    %26 = arith.divf %24, %25 : vector<8x128xf32>
    %27 = vector.extract_strided_slice %26 {offsets = [0, 0], sizes = [8, 32], strides = [1, 1]} : vector<8x128xf32> to vector<8x32xf32>
    %28 = vector.extract_strided_slice %26 {offsets = [0, 32], sizes = [8, 32], strides = [1, 1]} : vector<8x128xf32> to vector<8x32xf32>
    %29 = vector.extract_strided_slice %26 {offsets = [0, 64], sizes = [8, 32], strides = [1, 1]} : vector<8x128xf32> to vector<8x32xf32>
    %cst_25 = arith.constant 2.000000e+00 : f32
    %30 = vector.broadcast %cst_25 : f32 to vector<8x32xf32>
    %31 = arith.mulf %30, %29 : vector<8x32xf32>
    %cst_26 = arith.constant 1.000000e+00 : f32
    %32 = vector.broadcast %cst_26 : f32 to vector<8x32xf32>
    %33 = arith.subf %31, %32 : vector<8x32xf32>
    %34 = vector.extract_strided_slice %26 {offsets = [0, 96], sizes = [8, 32], strides = [1, 1]} : vector<8x128xf32> to vector<8x32xf32>
    %35 = arith.mulf %28, %16 : vector<8x32xf32>
    %36 = arith.mulf %27, %33 : vector<8x32xf32>
    %37 = arith.addf %35, %36 : vector<8x32xf32>
    %38 = math.tanh %37 : vector<8x32xf32>
    %39 = arith.mulf %34, %38 : vector<8x32xf32>
    %c8 = arith.constant 8 : index
    %c0_27 = arith.constant 0 : index
    %40 = vector.load %arg7[%c8, %c0_27] : memref<64x128xf32, #tpu.memory_space<vmem>>, vector<8x128xf32>
    %cst_28 = arith.constant dense<0.000000e+00> : vector<8x128xf32>
    %41 = tpu.matmul %39, %1, %cst_28 {dimension_numbers = #tpu.dot_dimension_numbers<[1], [0], [0], [1], [0, 0, 1, 1], [], []>} : vector<8x32xf32>, vector<32x128xf32>, vector<8x128xf32> -> vector<8x128xf32>
    %42 = arith.addf %40, %41 : vector<8x128xf32>
    %43 = arith.negf %42 : vector<8x128xf32>
    %44 = math.exp %43 : vector<8x128xf32>
    %cst_29 = arith.constant 1.000000e+00 : f32
    %45 = vector.broadcast %cst_29 : f32 to vector<8x128xf32>
    %46 = arith.addf %45, %44 : vector<8x128xf32>
    %47 = arith.divf %45, %46 : vector<8x128xf32>
    %48 = vector.extract_strided_slice %47 {offsets = [0, 0], sizes = [8, 32], strides = [1, 1]} : vector<8x128xf32> to vector<8x32xf32>
    %49 = vector.extract_strided_slice %47 {offsets = [0, 32], sizes = [8, 32], strides = [1, 1]} : vector<8x128xf32> to vector<8x32xf32>
    %50 = vector.extract_strided_slice %47 {offsets = [0, 64], sizes = [8, 32], strides = [1, 1]} : vector<8x128xf32> to vector<8x32xf32>
    %cst_30 = arith.constant 2.000000e+00 : f32
    %51 = vector.broadcast %cst_30 : f32 to vector<8x32xf32>
    %52 = arith.mulf %51, %50 : vector<8x32xf32>
    %cst_31 = arith.constant 1.000000e+00 : f32
    %53 = vector.broadcast %cst_31 : f32 to vector<8x32xf32>
    %54 = arith.subf %52, %53 : vector<8x32xf32>
    %55 = vector.extract_strided_slice %47 {offsets = [0, 96], sizes = [8, 32], strides = [1, 1]} : vector<8x128xf32> to vector<8x32xf32>
    %56 = arith.mulf %49, %37 : vector<8x32xf32>
    %57 = arith.mulf %48, %54 : vector<8x32xf32>
    %58 = arith.addf %56, %57 : vector<8x32xf32>
    %59 = math.tanh %58 : vector<8x32xf32>
    %60 = arith.mulf %55, %59 : vector<8x32xf32>
    %cst_32 = arith.constant dense<0.000000e+00> : vector<8x128xf32>
    %61 = tpu.matmul %39, %3, %cst_32 {dimension_numbers = #tpu.dot_dimension_numbers<[1], [0], [0], [1], [0, 0, 1, 1], [], []>} : vector<8x32xf32>, vector<32x128xf32>, vector<8x128xf32> -> vector<8x128xf32>
    %62 = vector.broadcast %5 : vector<1x128xf32> to vector<8x128xf32>
    %63 = arith.addf %61, %62 : vector<8x128xf32>
    %cst_33 = arith.constant dense<0.000000e+00> : vector<8x128xf32>
    %64 = tpu.matmul %14, %4, %cst_33 {dimension_numbers = #tpu.dot_dimension_numbers<[1], [0], [0], [1], [0, 0, 1, 1], [], []>} : vector<8x32xf32>, vector<32x128xf32>, vector<8x128xf32> -> vector<8x128xf32>
    %65 = arith.addf %63, %64 : vector<8x128xf32>
    %66 = arith.negf %65 : vector<8x128xf32>
    %67 = math.exp %66 : vector<8x128xf32>
    %cst_34 = arith.constant 1.000000e+00 : f32
    %68 = vector.broadcast %cst_34 : f32 to vector<8x128xf32>
    %69 = arith.addf %68, %67 : vector<8x128xf32>
    %70 = arith.divf %68, %69 : vector<8x128xf32>
    %71 = vector.extract_strided_slice %70 {offsets = [0, 0], sizes = [8, 32], strides = [1, 1]} : vector<8x128xf32> to vector<8x32xf32>
    %72 = vector.extract_strided_slice %70 {offsets = [0, 32], sizes = [8, 32], strides = [1, 1]} : vector<8x128xf32> to vector<8x32xf32>
    %73 = vector.extract_strided_slice %70 {offsets = [0, 64], sizes = [8, 32], strides = [1, 1]} : vector<8x128xf32> to vector<8x32xf32>
    %cst_35 = arith.constant 2.000000e+00 : f32
    %74 = vector.broadcast %cst_35 : f32 to vector<8x32xf32>
    %75 = arith.mulf %74, %73 : vector<8x32xf32>
    %cst_36 = arith.constant 1.000000e+00 : f32
    %76 = vector.broadcast %cst_36 : f32 to vector<8x32xf32>
    %77 = arith.subf %75, %76 : vector<8x32xf32>
    %78 = vector.extract_strided_slice %70 {offsets = [0, 96], sizes = [8, 32], strides = [1, 1]} : vector<8x128xf32> to vector<8x32xf32>
    %79 = arith.mulf %72, %18 : vector<8x32xf32>
    %80 = arith.mulf %71, %77 : vector<8x32xf32>
    %81 = arith.addf %79, %80 : vector<8x32xf32>
    %82 = math.tanh %81 : vector<8x32xf32>
    %83 = arith.mulf %78, %82 : vector<8x32xf32>
    %c16 = arith.constant 16 : index
    %c0_37 = arith.constant 0 : index
    %84 = vector.load %arg7[%c16, %c0_37] : memref<64x128xf32, #tpu.memory_space<vmem>>, vector<8x128xf32>
    %cst_38 = arith.constant dense<0.000000e+00> : vector<8x128xf32>
    %85 = tpu.matmul %60, %1, %cst_38 {dimension_numbers = #tpu.dot_dimension_numbers<[1], [0], [0], [1], [0, 0, 1, 1], [], []>} : vector<8x32xf32>, vector<32x128xf32>, vector<8x128xf32> -> vector<8x128xf32>
    %86 = arith.addf %84, %85 : vector<8x128xf32>
    %87 = arith.negf %86 : vector<8x128xf32>
    %88 = math.exp %87 : vector<8x128xf32>
    %cst_39 = arith.constant 1.000000e+00 : f32
    %89 = vector.broadcast %cst_39 : f32 to vector<8x128xf32>
    %90 = arith.addf %89, %88 : vector<8x128xf32>
    %91 = arith.divf %89, %90 : vector<8x128xf32>
    %92 = vector.extract_strided_slice %91 {offsets = [0, 0], sizes = [8, 32], strides = [1, 1]} : vector<8x128xf32> to vector<8x32xf32>
    %93 = vector.extract_strided_slice %91 {offsets = [0, 32], sizes = [8, 32], strides = [1, 1]} : vector<8x128xf32> to vector<8x32xf32>
    %94 = vector.extract_strided_slice %91 {offsets = [0, 64], sizes = [8, 32], strides = [1, 1]} : vector<8x128xf32> to vector<8x32xf32>
    %cst_40 = arith.constant 2.000000e+00 : f32
    %95 = vector.broadcast %cst_40 : f32 to vector<8x32xf32>
    %96 = arith.mulf %95, %94 : vector<8x32xf32>
    %cst_41 = arith.constant 1.000000e+00 : f32
    %97 = vector.broadcast %cst_41 : f32 to vector<8x32xf32>
    %98 = arith.subf %96, %97 : vector<8x32xf32>
    %99 = vector.extract_strided_slice %91 {offsets = [0, 96], sizes = [8, 32], strides = [1, 1]} : vector<8x128xf32> to vector<8x32xf32>
    %100 = arith.mulf %93, %58 : vector<8x32xf32>
    %101 = arith.mulf %92, %98 : vector<8x32xf32>
    %102 = arith.addf %100, %101 : vector<8x32xf32>
    %103 = math.tanh %102 : vector<8x32xf32>
    %104 = arith.mulf %99, %103 : vector<8x32xf32>
    %cst_42 = arith.constant dense<0.000000e+00> : vector<8x128xf32>
    %105 = tpu.matmul %60, %3, %cst_42 {dimension_numbers = #tpu.dot_dimension_numbers<[1], [0], [0], [1], [0, 0, 1, 1], [], []>} : vector<8x32xf32>, vector<32x128xf32>, vector<8x128xf32> -> vector<8x128xf32>
    %106 = vector.broadcast %5 : vector<1x128xf32> to vector<8x128xf32>
    %107 = arith.addf %105, %106 : vector<8x128xf32>
    %cst_43 = arith.constant dense<0.000000e+00> : vector<8x128xf32>
    %108 = tpu.matmul %83, %4, %cst_43 {dimension_numbers = #tpu.dot_dimension_numbers<[1], [0], [0], [1], [0, 0, 1, 1], [], []>} : vector<8x32xf32>, vector<32x128xf32>, vector<8x128xf32> -> vector<8x128xf32>
    %109 = arith.addf %107, %108 : vector<8x128xf32>
    %110 = arith.negf %109 : vector<8x128xf32>
    %111 = math.exp %110 : vector<8x128xf32>
    %cst_44 = arith.constant 1.000000e+00 : f32
    %112 = vector.broadcast %cst_44 : f32 to vector<8x128xf32>
    %113 = arith.addf %112, %111 : vector<8x128xf32>
    %114 = arith.divf %112, %113 : vector<8x128xf32>
    %115 = vector.extract_strided_slice %114 {offsets = [0, 0], sizes = [8, 32], strides = [1, 1]} : vector<8x128xf32> to vector<8x32xf32>
    %116 = vector.extract_strided_slice %114 {offsets = [0, 32], sizes = [8, 32], strides = [1, 1]} : vector<8x128xf32> to vector<8x32xf32>
    %117 = vector.extract_strided_slice %114 {offsets = [0, 64], sizes = [8, 32], strides = [1, 1]} : vector<8x128xf32> to vector<8x32xf32>
    %cst_45 = arith.constant 2.000000e+00 : f32
    %118 = vector.broadcast %cst_45 : f32 to vector<8x32xf32>
    %119 = arith.mulf %118, %117 : vector<8x32xf32>
    %cst_46 = arith.constant 1.000000e+00 : f32
    %120 = vector.broadcast %cst_46 : f32 to vector<8x32xf32>
    %121 = arith.subf %119, %120 : vector<8x32xf32>
    %122 = vector.extract_strided_slice %114 {offsets = [0, 96], sizes = [8, 32], strides = [1, 1]} : vector<8x128xf32> to vector<8x32xf32>
    %123 = arith.mulf %116, %81 : vector<8x32xf32>
    %124 = arith.mulf %115, %121 : vector<8x32xf32>
    %125 = arith.addf %123, %124 : vector<8x32xf32>
    %126 = math.tanh %125 : vector<8x32xf32>
    %127 = arith.mulf %122, %126 : vector<8x32xf32>
    %c24 = arith.constant 24 : index
    %c0_47 = arith.constant 0 : index
    %128 = vector.load %arg7[%c24, %c0_47] : memref<64x128xf32, #tpu.memory_space<vmem>>, vector<8x128xf32>
    %cst_48 = arith.constant dense<0.000000e+00> : vector<8x128xf32>
    %129 = tpu.matmul %104, %1, %cst_48 {dimension_numbers = #tpu.dot_dimension_numbers<[1], [0], [0], [1], [0, 0, 1, 1], [], []>} : vector<8x32xf32>, vector<32x128xf32>, vector<8x128xf32> -> vector<8x128xf32>
    %130 = arith.addf %128, %129 : vector<8x128xf32>
    %131 = arith.negf %130 : vector<8x128xf32>
    %132 = math.exp %131 : vector<8x128xf32>
    %cst_49 = arith.constant 1.000000e+00 : f32
    %133 = vector.broadcast %cst_49 : f32 to vector<8x128xf32>
    %134 = arith.addf %133, %132 : vector<8x128xf32>
    %135 = arith.divf %133, %134 : vector<8x128xf32>
    %136 = vector.extract_strided_slice %135 {offsets = [0, 0], sizes = [8, 32], strides = [1, 1]} : vector<8x128xf32> to vector<8x32xf32>
    %137 = vector.extract_strided_slice %135 {offsets = [0, 32], sizes = [8, 32], strides = [1, 1]} : vector<8x128xf32> to vector<8x32xf32>
    %138 = vector.extract_strided_slice %135 {offsets = [0, 64], sizes = [8, 32], strides = [1, 1]} : vector<8x128xf32> to vector<8x32xf32>
    %cst_50 = arith.constant 2.000000e+00 : f32
    %139 = vector.broadcast %cst_50 : f32 to vector<8x32xf32>
    %140 = arith.mulf %139, %138 : vector<8x32xf32>
    %cst_51 = arith.constant 1.000000e+00 : f32
    %141 = vector.broadcast %cst_51 : f32 to vector<8x32xf32>
    %142 = arith.subf %140, %141 : vector<8x32xf32>
    %143 = vector.extract_strided_slice %135 {offsets = [0, 96], sizes = [8, 32], strides = [1, 1]} : vector<8x128xf32> to vector<8x32xf32>
    %144 = arith.mulf %137, %102 : vector<8x32xf32>
    %145 = arith.mulf %136, %142 : vector<8x32xf32>
    %146 = arith.addf %144, %145 : vector<8x32xf32>
    %147 = math.tanh %146 : vector<8x32xf32>
    %148 = arith.mulf %143, %147 : vector<8x32xf32>
    %cst_52 = arith.constant dense<0.000000e+00> : vector<8x128xf32>
    %149 = tpu.matmul %104, %3, %cst_52 {dimension_numbers = #tpu.dot_dimension_numbers<[1], [0], [0], [1], [0, 0, 1, 1], [], []>} : vector<8x32xf32>, vector<32x128xf32>, vector<8x128xf32> -> vector<8x128xf32>
    %150 = vector.broadcast %5 : vector<1x128xf32> to vector<8x128xf32>
    %151 = arith.addf %149, %150 : vector<8x128xf32>
    %cst_53 = arith.constant dense<0.000000e+00> : vector<8x128xf32>
    %152 = tpu.matmul %127, %4, %cst_53 {dimension_numbers = #tpu.dot_dimension_numbers<[1], [0], [0], [1], [0, 0, 1, 1], [], []>} : vector<8x32xf32>, vector<32x128xf32>, vector<8x128xf32> -> vector<8x128xf32>
    %153 = arith.addf %151, %152 : vector<8x128xf32>
    %154 = arith.negf %153 : vector<8x128xf32>
    %155 = math.exp %154 : vector<8x128xf32>
    %cst_54 = arith.constant 1.000000e+00 : f32
    %156 = vector.broadcast %cst_54 : f32 to vector<8x128xf32>
    %157 = arith.addf %156, %155 : vector<8x128xf32>
    %158 = arith.divf %156, %157 : vector<8x128xf32>
    %159 = vector.extract_strided_slice %158 {offsets = [0, 0], sizes = [8, 32], strides = [1, 1]} : vector<8x128xf32> to vector<8x32xf32>
    %160 = vector.extract_strided_slice %158 {offsets = [0, 32], sizes = [8, 32], strides = [1, 1]} : vector<8x128xf32> to vector<8x32xf32>
    %161 = vector.extract_strided_slice %158 {offsets = [0, 64], sizes = [8, 32], strides = [1, 1]} : vector<8x128xf32> to vector<8x32xf32>
    %cst_55 = arith.constant 2.000000e+00 : f32
    %162 = vector.broadcast %cst_55 : f32 to vector<8x32xf32>
    %163 = arith.mulf %162, %161 : vector<8x32xf32>
    %cst_56 = arith.constant 1.000000e+00 : f32
    %164 = vector.broadcast %cst_56 : f32 to vector<8x32xf32>
    %165 = arith.subf %163, %164 : vector<8x32xf32>
    %166 = vector.extract_strided_slice %158 {offsets = [0, 96], sizes = [8, 32], strides = [1, 1]} : vector<8x128xf32> to vector<8x32xf32>
    %167 = arith.mulf %160, %125 : vector<8x32xf32>
    %168 = arith.mulf %159, %165 : vector<8x32xf32>
    %169 = arith.addf %167, %168 : vector<8x32xf32>
    %170 = math.tanh %169 : vector<8x32xf32>
    %171 = arith.mulf %166, %170 : vector<8x32xf32>
    %c32 = arith.constant 32 : index
    %c0_57 = arith.constant 0 : index
    %172 = vector.load %arg7[%c32, %c0_57] : memref<64x128xf32, #tpu.memory_space<vmem>>, vector<8x128xf32>
    %cst_58 = arith.constant dense<0.000000e+00> : vector<8x128xf32>
    %173 = tpu.matmul %148, %1, %cst_58 {dimension_numbers = #tpu.dot_dimension_numbers<[1], [0], [0], [1], [0, 0, 1, 1], [], []>} : vector<8x32xf32>, vector<32x128xf32>, vector<8x128xf32> -> vector<8x128xf32>
    %174 = arith.addf %172, %173 : vector<8x128xf32>
    %175 = arith.negf %174 : vector<8x128xf32>
    %176 = math.exp %175 : vector<8x128xf32>
    %cst_59 = arith.constant 1.000000e+00 : f32
    %177 = vector.broadcast %cst_59 : f32 to vector<8x128xf32>
    %178 = arith.addf %177, %176 : vector<8x128xf32>
    %179 = arith.divf %177, %178 : vector<8x128xf32>
    %180 = vector.extract_strided_slice %179 {offsets = [0, 0], sizes = [8, 32], strides = [1, 1]} : vector<8x128xf32> to vector<8x32xf32>
    %181 = vector.extract_strided_slice %179 {offsets = [0, 32], sizes = [8, 32], strides = [1, 1]} : vector<8x128xf32> to vector<8x32xf32>
    %182 = vector.extract_strided_slice %179 {offsets = [0, 64], sizes = [8, 32], strides = [1, 1]} : vector<8x128xf32> to vector<8x32xf32>
    %cst_60 = arith.constant 2.000000e+00 : f32
    %183 = vector.broadcast %cst_60 : f32 to vector<8x32xf32>
    %184 = arith.mulf %183, %182 : vector<8x32xf32>
    %cst_61 = arith.constant 1.000000e+00 : f32
    %185 = vector.broadcast %cst_61 : f32 to vector<8x32xf32>
    %186 = arith.subf %184, %185 : vector<8x32xf32>
    %187 = vector.extract_strided_slice %179 {offsets = [0, 96], sizes = [8, 32], strides = [1, 1]} : vector<8x128xf32> to vector<8x32xf32>
    %188 = arith.mulf %181, %146 : vector<8x32xf32>
    %189 = arith.mulf %180, %186 : vector<8x32xf32>
    %190 = arith.addf %188, %189 : vector<8x32xf32>
    %191 = math.tanh %190 : vector<8x32xf32>
    %192 = arith.mulf %187, %191 : vector<8x32xf32>
    %cst_62 = arith.constant dense<0.000000e+00> : vector<8x128xf32>
    %193 = tpu.matmul %148, %3, %cst_62 {dimension_numbers = #tpu.dot_dimension_numbers<[1], [0], [0], [1], [0, 0, 1, 1], [], []>} : vector<8x32xf32>, vector<32x128xf32>, vector<8x128xf32> -> vector<8x128xf32>
    %194 = vector.broadcast %5 : vector<1x128xf32> to vector<8x128xf32>
    %195 = arith.addf %193, %194 : vector<8x128xf32>
    %cst_63 = arith.constant dense<0.000000e+00> : vector<8x128xf32>
    %196 = tpu.matmul %171, %4, %cst_63 {dimension_numbers = #tpu.dot_dimension_numbers<[1], [0], [0], [1], [0, 0, 1, 1], [], []>} : vector<8x32xf32>, vector<32x128xf32>, vector<8x128xf32> -> vector<8x128xf32>
    %197 = arith.addf %195, %196 : vector<8x128xf32>
    %198 = arith.negf %197 : vector<8x128xf32>
    %199 = math.exp %198 : vector<8x128xf32>
    %cst_64 = arith.constant 1.000000e+00 : f32
    %200 = vector.broadcast %cst_64 : f32 to vector<8x128xf32>
    %201 = arith.addf %200, %199 : vector<8x128xf32>
    %202 = arith.divf %200, %201 : vector<8x128xf32>
    %203 = vector.extract_strided_slice %202 {offsets = [0, 0], sizes = [8, 32], strides = [1, 1]} : vector<8x128xf32> to vector<8x32xf32>
    %204 = vector.extract_strided_slice %202 {offsets = [0, 32], sizes = [8, 32], strides = [1, 1]} : vector<8x128xf32> to vector<8x32xf32>
    %205 = vector.extract_strided_slice %202 {offsets = [0, 64], sizes = [8, 32], strides = [1, 1]} : vector<8x128xf32> to vector<8x32xf32>
    %cst_65 = arith.constant 2.000000e+00 : f32
    %206 = vector.broadcast %cst_65 : f32 to vector<8x32xf32>
    %207 = arith.mulf %206, %205 : vector<8x32xf32>
    %cst_66 = arith.constant 1.000000e+00 : f32
    %208 = vector.broadcast %cst_66 : f32 to vector<8x32xf32>
    %209 = arith.subf %207, %208 : vector<8x32xf32>
    %210 = vector.extract_strided_slice %202 {offsets = [0, 96], sizes = [8, 32], strides = [1, 1]} : vector<8x128xf32> to vector<8x32xf32>
    %211 = arith.mulf %204, %169 : vector<8x32xf32>
    %212 = arith.mulf %203, %209 : vector<8x32xf32>
    %213 = arith.addf %211, %212 : vector<8x32xf32>
    %214 = math.tanh %213 : vector<8x32xf32>
    %215 = arith.mulf %210, %214 : vector<8x32xf32>
    %c40 = arith.constant 40 : index
    %c0_67 = arith.constant 0 : index
    %216 = vector.load %arg7[%c40, %c0_67] : memref<64x128xf32, #tpu.memory_space<vmem>>, vector<8x128xf32>
    %cst_68 = arith.constant dense<0.000000e+00> : vector<8x128xf32>
    %217 = tpu.matmul %192, %1, %cst_68 {dimension_numbers = #tpu.dot_dimension_numbers<[1], [0], [0], [1], [0, 0, 1, 1], [], []>} : vector<8x32xf32>, vector<32x128xf32>, vector<8x128xf32> -> vector<8x128xf32>
    %218 = arith.addf %216, %217 : vector<8x128xf32>
    %219 = arith.negf %218 : vector<8x128xf32>
    %220 = math.exp %219 : vector<8x128xf32>
    %cst_69 = arith.constant 1.000000e+00 : f32
    %221 = vector.broadcast %cst_69 : f32 to vector<8x128xf32>
    %222 = arith.addf %221, %220 : vector<8x128xf32>
    %223 = arith.divf %221, %222 : vector<8x128xf32>
    %224 = vector.extract_strided_slice %223 {offsets = [0, 0], sizes = [8, 32], strides = [1, 1]} : vector<8x128xf32> to vector<8x32xf32>
    %225 = vector.extract_strided_slice %223 {offsets = [0, 32], sizes = [8, 32], strides = [1, 1]} : vector<8x128xf32> to vector<8x32xf32>
    %226 = vector.extract_strided_slice %223 {offsets = [0, 64], sizes = [8, 32], strides = [1, 1]} : vector<8x128xf32> to vector<8x32xf32>
    %cst_70 = arith.constant 2.000000e+00 : f32
    %227 = vector.broadcast %cst_70 : f32 to vector<8x32xf32>
    %228 = arith.mulf %227, %226 : vector<8x32xf32>
    %cst_71 = arith.constant 1.000000e+00 : f32
    %229 = vector.broadcast %cst_71 : f32 to vector<8x32xf32>
    %230 = arith.subf %228, %229 : vector<8x32xf32>
    %231 = vector.extract_strided_slice %223 {offsets = [0, 96], sizes = [8, 32], strides = [1, 1]} : vector<8x128xf32> to vector<8x32xf32>
    %232 = arith.mulf %225, %190 : vector<8x32xf32>
    %233 = arith.mulf %224, %230 : vector<8x32xf32>
    %234 = arith.addf %232, %233 : vector<8x32xf32>
    %235 = math.tanh %234 : vector<8x32xf32>
    %236 = arith.mulf %231, %235 : vector<8x32xf32>
    %cst_72 = arith.constant dense<0.000000e+00> : vector<8x128xf32>
    %237 = tpu.matmul %192, %3, %cst_72 {dimension_numbers = #tpu.dot_dimension_numbers<[1], [0], [0], [1], [0, 0, 1, 1], [], []>} : vector<8x32xf32>, vector<32x128xf32>, vector<8x128xf32> -> vector<8x128xf32>
    %238 = vector.broadcast %5 : vector<1x128xf32> to vector<8x128xf32>
    %239 = arith.addf %237, %238 : vector<8x128xf32>
    %cst_73 = arith.constant dense<0.000000e+00> : vector<8x128xf32>
    %240 = tpu.matmul %215, %4, %cst_73 {dimension_numbers = #tpu.dot_dimension_numbers<[1], [0], [0], [1], [0, 0, 1, 1], [], []>} : vector<8x32xf32>, vector<32x128xf32>, vector<8x128xf32> -> vector<8x128xf32>
    %241 = arith.addf %239, %240 : vector<8x128xf32>
    %242 = arith.negf %241 : vector<8x128xf32>
    %243 = math.exp %242 : vector<8x128xf32>
    %cst_74 = arith.constant 1.000000e+00 : f32
    %244 = vector.broadcast %cst_74 : f32 to vector<8x128xf32>
    %245 = arith.addf %244, %243 : vector<8x128xf32>
    %246 = arith.divf %244, %245 : vector<8x128xf32>
    %247 = vector.extract_strided_slice %246 {offsets = [0, 0], sizes = [8, 32], strides = [1, 1]} : vector<8x128xf32> to vector<8x32xf32>
    %248 = vector.extract_strided_slice %246 {offsets = [0, 32], sizes = [8, 32], strides = [1, 1]} : vector<8x128xf32> to vector<8x32xf32>
    %249 = vector.extract_strided_slice %246 {offsets = [0, 64], sizes = [8, 32], strides = [1, 1]} : vector<8x128xf32> to vector<8x32xf32>
    %cst_75 = arith.constant 2.000000e+00 : f32
    %250 = vector.broadcast %cst_75 : f32 to vector<8x32xf32>
    %251 = arith.mulf %250, %249 : vector<8x32xf32>
    %cst_76 = arith.constant 1.000000e+00 : f32
    %252 = vector.broadcast %cst_76 : f32 to vector<8x32xf32>
    %253 = arith.subf %251, %252 : vector<8x32xf32>
    %254 = vector.extract_strided_slice %246 {offsets = [0, 96], sizes = [8, 32], strides = [1, 1]} : vector<8x128xf32> to vector<8x32xf32>
    %255 = arith.mulf %248, %213 : vector<8x32xf32>
    %256 = arith.mulf %247, %253 : vector<8x32xf32>
    %257 = arith.addf %255, %256 : vector<8x32xf32>
    %258 = math.tanh %257 : vector<8x32xf32>
    %259 = arith.mulf %254, %258 : vector<8x32xf32>
    %c48 = arith.constant 48 : index
    %c0_77 = arith.constant 0 : index
    %260 = vector.load %arg7[%c48, %c0_77] : memref<64x128xf32, #tpu.memory_space<vmem>>, vector<8x128xf32>
    %cst_78 = arith.constant dense<0.000000e+00> : vector<8x128xf32>
    %261 = tpu.matmul %236, %1, %cst_78 {dimension_numbers = #tpu.dot_dimension_numbers<[1], [0], [0], [1], [0, 0, 1, 1], [], []>} : vector<8x32xf32>, vector<32x128xf32>, vector<8x128xf32> -> vector<8x128xf32>
    %262 = arith.addf %260, %261 : vector<8x128xf32>
    %263 = arith.negf %262 : vector<8x128xf32>
    %264 = math.exp %263 : vector<8x128xf32>
    %cst_79 = arith.constant 1.000000e+00 : f32
    %265 = vector.broadcast %cst_79 : f32 to vector<8x128xf32>
    %266 = arith.addf %265, %264 : vector<8x128xf32>
    %267 = arith.divf %265, %266 : vector<8x128xf32>
    %268 = vector.extract_strided_slice %267 {offsets = [0, 0], sizes = [8, 32], strides = [1, 1]} : vector<8x128xf32> to vector<8x32xf32>
    %269 = vector.extract_strided_slice %267 {offsets = [0, 32], sizes = [8, 32], strides = [1, 1]} : vector<8x128xf32> to vector<8x32xf32>
    %270 = vector.extract_strided_slice %267 {offsets = [0, 64], sizes = [8, 32], strides = [1, 1]} : vector<8x128xf32> to vector<8x32xf32>
    %cst_80 = arith.constant 2.000000e+00 : f32
    %271 = vector.broadcast %cst_80 : f32 to vector<8x32xf32>
    %272 = arith.mulf %271, %270 : vector<8x32xf32>
    %cst_81 = arith.constant 1.000000e+00 : f32
    %273 = vector.broadcast %cst_81 : f32 to vector<8x32xf32>
    %274 = arith.subf %272, %273 : vector<8x32xf32>
    %275 = vector.extract_strided_slice %267 {offsets = [0, 96], sizes = [8, 32], strides = [1, 1]} : vector<8x128xf32> to vector<8x32xf32>
    %276 = arith.mulf %269, %234 : vector<8x32xf32>
    %277 = arith.mulf %268, %274 : vector<8x32xf32>
    %278 = arith.addf %276, %277 : vector<8x32xf32>
    %279 = math.tanh %278 : vector<8x32xf32>
    %280 = arith.mulf %275, %279 : vector<8x32xf32>
    %cst_82 = arith.constant dense<0.000000e+00> : vector<8x128xf32>
    %281 = tpu.matmul %236, %3, %cst_82 {dimension_numbers = #tpu.dot_dimension_numbers<[1], [0], [0], [1], [0, 0, 1, 1], [], []>} : vector<8x32xf32>, vector<32x128xf32>, vector<8x128xf32> -> vector<8x128xf32>
    %282 = vector.broadcast %5 : vector<1x128xf32> to vector<8x128xf32>
    %283 = arith.addf %281, %282 : vector<8x128xf32>
    %cst_83 = arith.constant dense<0.000000e+00> : vector<8x128xf32>
    %284 = tpu.matmul %259, %4, %cst_83 {dimension_numbers = #tpu.dot_dimension_numbers<[1], [0], [0], [1], [0, 0, 1, 1], [], []>} : vector<8x32xf32>, vector<32x128xf32>, vector<8x128xf32> -> vector<8x128xf32>
    %285 = arith.addf %283, %284 : vector<8x128xf32>
    %286 = arith.negf %285 : vector<8x128xf32>
    %287 = math.exp %286 : vector<8x128xf32>
    %cst_84 = arith.constant 1.000000e+00 : f32
    %288 = vector.broadcast %cst_84 : f32 to vector<8x128xf32>
    %289 = arith.addf %288, %287 : vector<8x128xf32>
    %290 = arith.divf %288, %289 : vector<8x128xf32>
    %291 = vector.extract_strided_slice %290 {offsets = [0, 0], sizes = [8, 32], strides = [1, 1]} : vector<8x128xf32> to vector<8x32xf32>
    %292 = vector.extract_strided_slice %290 {offsets = [0, 32], sizes = [8, 32], strides = [1, 1]} : vector<8x128xf32> to vector<8x32xf32>
    %293 = vector.extract_strided_slice %290 {offsets = [0, 64], sizes = [8, 32], strides = [1, 1]} : vector<8x128xf32> to vector<8x32xf32>
    %cst_85 = arith.constant 2.000000e+00 : f32
    %294 = vector.broadcast %cst_85 : f32 to vector<8x32xf32>
    %295 = arith.mulf %294, %293 : vector<8x32xf32>
    %cst_86 = arith.constant 1.000000e+00 : f32
    %296 = vector.broadcast %cst_86 : f32 to vector<8x32xf32>
    %297 = arith.subf %295, %296 : vector<8x32xf32>
    %298 = vector.extract_strided_slice %290 {offsets = [0, 96], sizes = [8, 32], strides = [1, 1]} : vector<8x128xf32> to vector<8x32xf32>
    %299 = arith.mulf %292, %257 : vector<8x32xf32>
    %300 = arith.mulf %291, %297 : vector<8x32xf32>
    %301 = arith.addf %299, %300 : vector<8x32xf32>
    %302 = math.tanh %301 : vector<8x32xf32>
    %303 = arith.mulf %298, %302 : vector<8x32xf32>
    %c56 = arith.constant 56 : index
    %c0_87 = arith.constant 0 : index
    %304 = vector.load %arg7[%c56, %c0_87] : memref<64x128xf32, #tpu.memory_space<vmem>>, vector<8x128xf32>
    %cst_88 = arith.constant dense<0.000000e+00> : vector<8x128xf32>
    %305 = tpu.matmul %280, %1, %cst_88 {dimension_numbers = #tpu.dot_dimension_numbers<[1], [0], [0], [1], [0, 0, 1, 1], [], []>} : vector<8x32xf32>, vector<32x128xf32>, vector<8x128xf32> -> vector<8x128xf32>
    %306 = arith.addf %304, %305 : vector<8x128xf32>
    %307 = arith.negf %306 : vector<8x128xf32>
    %308 = math.exp %307 : vector<8x128xf32>
    %cst_89 = arith.constant 1.000000e+00 : f32
    %309 = vector.broadcast %cst_89 : f32 to vector<8x128xf32>
    %310 = arith.addf %309, %308 : vector<8x128xf32>
    %311 = arith.divf %309, %310 : vector<8x128xf32>
    %312 = vector.extract_strided_slice %311 {offsets = [0, 0], sizes = [8, 32], strides = [1, 1]} : vector<8x128xf32> to vector<8x32xf32>
    %313 = vector.extract_strided_slice %311 {offsets = [0, 32], sizes = [8, 32], strides = [1, 1]} : vector<8x128xf32> to vector<8x32xf32>
    %314 = vector.extract_strided_slice %311 {offsets = [0, 64], sizes = [8, 32], strides = [1, 1]} : vector<8x128xf32> to vector<8x32xf32>
    %cst_90 = arith.constant 2.000000e+00 : f32
    %315 = vector.broadcast %cst_90 : f32 to vector<8x32xf32>
    %316 = arith.mulf %315, %314 : vector<8x32xf32>
    %cst_91 = arith.constant 1.000000e+00 : f32
    %317 = vector.broadcast %cst_91 : f32 to vector<8x32xf32>
    %318 = arith.subf %316, %317 : vector<8x32xf32>
    %319 = vector.extract_strided_slice %311 {offsets = [0, 96], sizes = [8, 32], strides = [1, 1]} : vector<8x128xf32> to vector<8x32xf32>
    %320 = arith.mulf %313, %278 : vector<8x32xf32>
    %321 = arith.mulf %312, %318 : vector<8x32xf32>
    %322 = arith.addf %320, %321 : vector<8x32xf32>
    %323 = math.tanh %322 : vector<8x32xf32>
    %324 = arith.mulf %319, %323 : vector<8x32xf32>
    %cst_92 = arith.constant dense<0.000000e+00> : vector<8x128xf32>
    %325 = tpu.matmul %280, %3, %cst_92 {dimension_numbers = #tpu.dot_dimension_numbers<[1], [0], [0], [1], [0, 0, 1, 1], [], []>} : vector<8x32xf32>, vector<32x128xf32>, vector<8x128xf32> -> vector<8x128xf32>
    %326 = vector.broadcast %5 : vector<1x128xf32> to vector<8x128xf32>
    %327 = arith.addf %325, %326 : vector<8x128xf32>
    %cst_93 = arith.constant dense<0.000000e+00> : vector<8x128xf32>
    %328 = tpu.matmul %303, %4, %cst_93 {dimension_numbers = #tpu.dot_dimension_numbers<[1], [0], [0], [1], [0, 0, 1, 1], [], []>} : vector<8x32xf32>, vector<32x128xf32>, vector<8x128xf32> -> vector<8x128xf32>
    %329 = arith.addf %327, %328 : vector<8x128xf32>
    %330 = arith.negf %329 : vector<8x128xf32>
    %331 = math.exp %330 : vector<8x128xf32>
    %cst_94 = arith.constant 1.000000e+00 : f32
    %332 = vector.broadcast %cst_94 : f32 to vector<8x128xf32>
    %333 = arith.addf %332, %331 : vector<8x128xf32>
    %334 = arith.divf %332, %333 : vector<8x128xf32>
    %335 = vector.extract_strided_slice %334 {offsets = [0, 0], sizes = [8, 32], strides = [1, 1]} : vector<8x128xf32> to vector<8x32xf32>
    %336 = vector.extract_strided_slice %334 {offsets = [0, 32], sizes = [8, 32], strides = [1, 1]} : vector<8x128xf32> to vector<8x32xf32>
    %337 = vector.extract_strided_slice %334 {offsets = [0, 64], sizes = [8, 32], strides = [1, 1]} : vector<8x128xf32> to vector<8x32xf32>
    %cst_95 = arith.constant 2.000000e+00 : f32
    %338 = vector.broadcast %cst_95 : f32 to vector<8x32xf32>
    %339 = arith.mulf %338, %337 : vector<8x32xf32>
    %cst_96 = arith.constant 1.000000e+00 : f32
    %340 = vector.broadcast %cst_96 : f32 to vector<8x32xf32>
    %341 = arith.subf %339, %340 : vector<8x32xf32>
    %342 = vector.extract_strided_slice %334 {offsets = [0, 96], sizes = [8, 32], strides = [1, 1]} : vector<8x128xf32> to vector<8x32xf32>
    %343 = arith.mulf %336, %301 : vector<8x32xf32>
    %344 = arith.mulf %335, %341 : vector<8x32xf32>
    %345 = arith.addf %343, %344 : vector<8x32xf32>
    %346 = math.tanh %345 : vector<8x32xf32>
    %347 = arith.mulf %342, %346 : vector<8x32xf32>
    %cst_97 = arith.constant dense<0.000000e+00> : vector<8x128xf32>
    %348 = tpu.matmul %324, %3, %cst_97 {dimension_numbers = #tpu.dot_dimension_numbers<[1], [0], [0], [1], [0, 0, 1, 1], [], []>} : vector<8x32xf32>, vector<32x128xf32>, vector<8x128xf32> -> vector<8x128xf32>
    %349 = vector.broadcast %5 : vector<1x128xf32> to vector<8x128xf32>
    %350 = arith.addf %348, %349 : vector<8x128xf32>
    %cst_98 = arith.constant dense<0.000000e+00> : vector<8x128xf32>
    %351 = tpu.matmul %347, %4, %cst_98 {dimension_numbers = #tpu.dot_dimension_numbers<[1], [0], [0], [1], [0, 0, 1, 1], [], []>} : vector<8x32xf32>, vector<32x128xf32>, vector<8x128xf32> -> vector<8x128xf32>
    %352 = arith.addf %350, %351 : vector<8x128xf32>
    %353 = arith.negf %352 : vector<8x128xf32>
    %354 = math.exp %353 : vector<8x128xf32>
    %cst_99 = arith.constant 1.000000e+00 : f32
    %355 = vector.broadcast %cst_99 : f32 to vector<8x128xf32>
    %356 = arith.addf %355, %354 : vector<8x128xf32>
    %357 = arith.divf %355, %356 : vector<8x128xf32>
    %358 = vector.extract_strided_slice %357 {offsets = [0, 0], sizes = [8, 32], strides = [1, 1]} : vector<8x128xf32> to vector<8x32xf32>
    %359 = vector.extract_strided_slice %357 {offsets = [0, 32], sizes = [8, 32], strides = [1, 1]} : vector<8x128xf32> to vector<8x32xf32>
    %360 = vector.extract_strided_slice %357 {offsets = [0, 64], sizes = [8, 32], strides = [1, 1]} : vector<8x128xf32> to vector<8x32xf32>
    %cst_100 = arith.constant 2.000000e+00 : f32
    %361 = vector.broadcast %cst_100 : f32 to vector<8x32xf32>
    %362 = arith.mulf %361, %360 : vector<8x32xf32>
    %cst_101 = arith.constant 1.000000e+00 : f32
    %363 = vector.broadcast %cst_101 : f32 to vector<8x32xf32>
    %364 = arith.subf %362, %363 : vector<8x32xf32>
    %365 = vector.extract_strided_slice %357 {offsets = [0, 96], sizes = [8, 32], strides = [1, 1]} : vector<8x128xf32> to vector<8x32xf32>
    %366 = arith.mulf %359, %345 : vector<8x32xf32>
    %367 = arith.mulf %358, %364 : vector<8x32xf32>
    %368 = arith.addf %366, %367 : vector<8x32xf32>
    %369 = math.tanh %368 : vector<8x32xf32>
    %370 = arith.mulf %365, %369 : vector<8x32xf32>
    %c0_102 = arith.constant 0 : index
    %c0_103 = arith.constant 0 : index
    %c0_104 = arith.constant 0 : index
    %371 = vector.load %arg5[%c0_102, %c0_103, %c0_104] : memref<2x8x32xf32, #tpu.memory_space<vmem>>, vector<1x8x32xf32>
    %372 = vector.shape_cast %371 : vector<1x8x32xf32> to vector<8x32xf32>
    %373 = vector.shape_cast %324 : vector<8x32xf32> to vector<1x8x32xf32>
    tpu.vector_store %arg5[%c0_102, %c0_103, %c0_104], %373 {strides = array<i32>} : memref<2x8x32xf32, #tpu.memory_space<vmem>>, vector<1x8x32xf32>,
    %c0_105 = arith.constant 0 : index
    %c0_106 = arith.constant 0 : index
    %c0_107 = arith.constant 0 : index
    %374 = vector.load %arg6[%c0_105, %c0_106, %c0_107] : memref<2x8x32xf32, #tpu.memory_space<vmem>>, vector<1x8x32xf32>
    %375 = vector.shape_cast %374 : vector<1x8x32xf32> to vector<8x32xf32>
    %376 = vector.shape_cast %322 : vector<8x32xf32> to vector<1x8x32xf32>
    tpu.vector_store %arg6[%c0_105, %c0_106, %c0_107], %376 {strides = array<i32>} : memref<2x8x32xf32, #tpu.memory_space<vmem>>, vector<1x8x32xf32>,
    %c1_108 = arith.constant 1 : index
    %c0_109 = arith.constant 0 : index
    %c0_110 = arith.constant 0 : index
    %377 = vector.load %arg5[%c1_108, %c0_109, %c0_110] : memref<2x8x32xf32, #tpu.memory_space<vmem>>, vector<1x8x32xf32>
    %378 = vector.shape_cast %377 : vector<1x8x32xf32> to vector<8x32xf32>
    %379 = vector.shape_cast %370 : vector<8x32xf32> to vector<1x8x32xf32>
    tpu.vector_store %arg5[%c1_108, %c0_109, %c0_110], %379 {strides = array<i32>} : memref<2x8x32xf32, #tpu.memory_space<vmem>>, vector<1x8x32xf32>,
    %c1_111 = arith.constant 1 : index
    %c0_112 = arith.constant 0 : index
    %c0_113 = arith.constant 0 : index
    %380 = vector.load %arg6[%c1_111, %c0_112, %c0_113] : memref<2x8x32xf32, #tpu.memory_space<vmem>>, vector<1x8x32xf32>
    %381 = vector.shape_cast %380 : vector<1x8x32xf32> to vector<8x32xf32>
    %382 = vector.shape_cast %368 : vector<8x32xf32> to vector<1x8x32xf32>
    tpu.vector_store %arg6[%c1_111, %c0_112, %c0_113], %382 {strides = array<i32>} : memref<2x8x32xf32, #tpu.memory_space<vmem>>, vector<1x8x32xf32>,
    %c176 = arith.constant 176 : index
    %c0_114 = arith.constant 0 : index
    %383 = vector.load %arg3[%c176, %c0_114] : memref<184x128xf32, #tpu.memory_space<vmem>>, vector<1x32xf32>
    %c177 = arith.constant 177 : index
    %c0_115 = arith.constant 0 : index
    %384 = vector.load %arg3[%c177, %c0_115] : memref<184x128xf32, #tpu.memory_space<vmem>>, vector<1x1xf32>
    %385 = vector.broadcast %383 : vector<1x32xf32> to vector<8x32xf32>
    %386 = arith.mulf %370, %385 : vector<8x32xf32>
    %cst_116 = arith.constant dense<0.000000e+00> : vector<8xf32>
    %387 = vector.multi_reduction <add>, %386, %cst_116 [1] : vector<8x32xf32> to vector<8xf32>
    %388 = vector.shape_cast %387 : vector<8xf32> to vector<8x1xf32>
    %389 = vector.broadcast %384 : vector<1x1xf32> to vector<8x1xf32>
    %390 = arith.addf %388, %389 : vector<8x1xf32>
    %391 = arith.negf %390 : vector<8x1xf32>
    %392 = math.exp %391 : vector<8x1xf32>
    %cst_117 = arith.constant 1.000000e+00 : f32
    %393 = vector.broadcast %cst_117 : f32 to vector<8x1xf32>
    %394 = arith.addf %393, %392 : vector<8x1xf32>
    %395 = arith.divf %393, %394 : vector<8x1xf32>
    %c0_118 = arith.constant 0 : index
    %c0_119 = arith.constant 0 : index
    %396 = vector.load %arg4[%c0_118, %c0_119] : memref<8x1xf32, #tpu.memory_space<vmem>>, vector<8x1xf32>
    tpu.vector_store %arg4[%c0_118, %c0_119], %395 {strides = array<i32>} : memref<8x1xf32, #tpu.memory_space<vmem>>, vector<8x1xf32>,
    return
  }
}

</mosaic_0001>

<bundles_post_ra>
// kernel: ltlnet_forward.1
= control target key start
LH: loop header
LB: loop body
LE: loop exit
PB: predicated region body
PF: predicated region fallthrough
CT: control target
= control target key end

     0   :  { %12 = vsyncpa [#allocation4], 0  ;;  %s3291_s21 = smov [#allocation3]   ;;  %s3737_s0 = inlined_call_operand.vmem [shape: f32[64,64], index: 0, kind: input, shape index: {}]   ;;  %s3738_s1 = inlined_call_operand.vmem [shape: f32[2,8,32], index: 1, kind: input, shape index: {}]   ;;  %s3739_s2 = inlined_call_operand.vmem [shape: f32[2,8,32], index: 2, kind: input, shape index: {}]   ;;  %s3740_s3 = inlined_call_operand.hbm [shape: f32[184,128], index: 3, kind: input, shape index: {}]   ;;  %s3741_s4 = inlined_call_operand.vmem [shape: f32[8,1], index: 4, kind: output, shape index: {0}]   ;;  %s3742_s5 = inlined_call_operand.vmem [shape: f32[2,8,32], index: 5, kind: output, shape index: {1}]   ;;  %s3743_s6 = inlined_call_operand.vmem [shape: f32[2,8,32], index: 6, kind: output, shape index: {2}]  }
   0x1   :  { %s24_s22 = sshll.u32 %s3291_s21, 4  ;;  %s3267_s25 = scalar_lea.hbm %s3740_s3, 2944  ;;  %s25_s22 = int_to_ptr.vmem [resolvable:$true] %s24_s22 }
   0x2   :  { %p3268_p0 = scmp.ne.s32.totalorder %s3740_s3, %s3267_s25  ;;  %p3271_p1 = scmp.lt.u32.totalorder %s3267_s25, %s3740_s3 }
   0x4   :  { %p3273_p2 = pnand %p3271_p1, %p3268_p0 }
   0x6   :  { %3276 = shalt.err (!%p3273_p2)
}
   0x7   :  { %s3277_s30 = scalar_lea.vmem %s25_s22, 2944  ;;  %p3282_p4 = scmp.lt.s32.totalorder %s25_s22, %s25_s22 }
   0x8   :  { %p3278_p3 = scmp.ne.s32.totalorder %s25_s22, %s3277_s30  ;;  %p3283_p5 = scmp.lt.s32.totalorder %s3277_s30, %s3277_s30 }
   0xa   :  { %p3284_p6 = por %p3283_p5, %p3282_p4 }
   0xc   :  { %p3285_p7 = pnand %p3284_p6, %p3278_p3 }
   0xe   :  { %3288 = shalt.err (!%p3285_p7)
}
   0xf   :  { %s3292_s7 = smov 128   ;;  %s3293_s8 = smov 8  }
  0x10   :  { %30 = dma.hbm_to_vmem [thread:$0]  %s3740_s3, 2944, %s25_s22, [#allocation4], %s3292_s7, %s3292_s7, %s3293_s8  }
  0x11   :  { %3289 = dma.done.wait [#allocation4], 2944  }
  0x12   :  { %3290 = vsyncadd [#allocation4], 4294964352  ;;  %v3294_v0 = vmov 0.0|0.0   ;;  %vm3295_vm0 = vmmov 0   ;;  %v3296_v1 = vmov 0.0   ;;  %v34_v2 = vld [vmem:[#allocation3] sm:$0xff] }
  0x13   :  { %2990 = vmatprep.subr.bf16.mxu1 %v3294_v0  ;;  %2718 = vmatprep.mubr.msk.f32.mxu1 %vm3295_vm0, %v3296_v1  ;;  %v35_v3 = vld [vmem:[#allocation3 + $0x8] sm:$0xff]  ;;  %v36_v4 = vld [vmem:[#allocation3 + $0x10] sm:$0xff]  ;;  %v37_v6 = vld [vmem:[#allocation3 + $0x18] sm:$0xff]  ;;  %vm68_vm1 = vcmask 523264   ;;  %vm213_vm2 = vcmask 261120   ;;  %s3297_s16 = smov 64  }
  0x14   :  { %v2974_v5 = vpack.c.bf16 %v35_v3, %v34_v2  ;;  %v38_v7 = vld [vmem:[#allocation3 + $0x20] sm:$0xff]  ;;  %v2978_v8 = vpack.c.bf16 %v37_v6, %v36_v4  ;;  %v39_v9 = vld [vmem:[#allocation3 + $0x28] sm:$0xff]  ;;  %v44_v14 = vld [vmem:[#allocation3 + $0x50] sm:$0xff]  ;;  %s3298_s19 = smov 32   ;;  %s3299_s3 = smov 96   ;;  %vm2458_vm3 = vcmask 7168  }
  0x15   :  { %v42_v10 = vld [vmem:[#allocation3 + $0x40] sm:$0xff]  ;;  %v43_v11 = vld [vmem:[#allocation3 + $0x48] sm:$0xff]  ;;  %v45_v15 = vld [vmem:[#allocation3 + $0x58] sm:$0xff]  ;;  %v2982_v16 = vpack.c.bf16 %v39_v9, %v38_v7 }
  0x16   :  { %2975 = vmatprep.subr.bf16.mxu0 %v2974_v5  ;;  %v3350_v12 = vpack.c.bf16 %v43_v11, %v42_v10  ;;  %v56_v13 = vld [vmem:[%s3737_s0] sm:$0xff]  ;;  %v3357_v17 = vpack.c.bf16 %v45_v15, %v44_v14  ;;  %v40_v18 = vld [vmem:[#allocation3 + $0x30] sm:$0xff]  ;;  %v41_v19 = vld [vmem:[#allocation3 + $0x38] sm:$0xff] }
  0x17   :  { %2977 = vmatpush3.bf16.msra.mxu0 %v2974_v5  ;;  %2698 = vmatprep.mubr.msk.f32.mxu0 %vm68_vm1, %v56_v13  ;;  %v2986_v20 = vpack.c.bf16 %v41_v19, %v40_v18  ;;  %v206_v21 = vld [vmem:[%s3738_s1] sm:$0xff]  ;;  %v57_v22 = vld [vmem:[%s3737_s0 + $0x8] sm:$0xff]  ;;  %v48_v47 = vld [vmem:[#allocation3 + $0x70] sm:$0xff] }
  0x18   :  { %2979 = vmatprep.subr.bf16.mxu0 %v2978_v8  ;;  %2992 = vmatpush3.bf16.msra.mxu1 %v3350_v12  ;;  %v3381_v25 = vld [vmem:[#allocation3 + $0x60] ss:$0 sm:$0xff]  ;;  %v47_v46 = vld [vmem:[#allocation3 + $0x68] sm:$0xff]  ;;  %v49_v49 = vld [vmem:[#allocation3 + $0x78] sm:$0xff] }
  0x19   :  { %2993 = vmatprep.subr.bf16.mxu1 %v3294_v0  ;;  %v209_v36 = vld [vmem:[%s3739_s2] sm:$0xff]  ;;  %v3395_v48 = vpack.c.bf16 %v48_v47, %v47_v46  ;;  %v51_v53 = vld [vmem:[#allocation3 + $0x88] sm:$0xff]  ;;  %v52_v54 = vld [vmem:[#allocation3 + $0x90] sm:$0xff] }
  0x1a   :  { %v50_v50 = vld [vmem:[#allocation3 + $0x80] sm:$0xff]  ;;  %v3405_v55 = vpack.c.bf16 %v52_v54, %v51_v53  ;;  %v53_v56 = vld [vmem:[#allocation3 + $0x98] sm:$0xff]  ;;  %v2482_v59 = vld [vmem:[%s3738_s1 + $0x8] sm:$0xff] }
  0x1b   :  { %2981 = vmatpush3.bf16.msra.mxu0 %v2978_v8  ;;  %v3399_v52 = vpack.c.bf16 %v50_v50, %v49_v49  ;;  %v54_v57 = vld [vmem:[#allocation3 + $0xa0] sm:$0xff]  ;;  %v3428_v3 = vld [vmem:[#allocation3 + $0xa8] ss:$0 sm:$0xff] }
  0x1c   :  { %2983 = vmatprep.subr.bf16.mxu0 %v2982_v16  ;;  %2995 = vmatpush3.bf16.msra.mxu1 %v3357_v17  ;;  %v3410_v58 = vpack.c.bf16 %v54_v57, %v53_v56 }
  0x1d   :  { %2996 = vmatprep.subr.bf16.mxu1 %v3294_v0 }
  0x1f   :  { %2985 = vmatpush3.bf16.msra.mxu0 %v2982_v16  ;;  %2719 = vmatmul.mubr.msk.f32.vlgmr.msra.gmra.mrb[0].mxu1 %vm213_vm2, %v206_v21 }
  0x20   :  { %2987 = vmatprep.subr.bf16.mxu0 %v2986_v20  ;;  %2998 = vmatpush3.bf16.msra.mxu1 %v3350_v12 }
  0x21   :  { %2999 = vmatprep.subr.bf16.mxu1 %v3294_v0  ;;  %2729 = vmatprep.mubr.msk.f32.mxu1 %vm3295_vm0, %v3296_v1 }
  0x23   :  { %2989 = vmatpush3.bf16.msra.mxu0 %v2986_v20  ;;  %v2483_v20 = vld [vmem:[%s3739_s2 + $0x8] sm:$0xff] }
  0x24   :  { %3001 = vmatpush3.bf16.msra.mxu1 %v3357_v17  ;;  %3014 = vmatprep.subr.bf16.mxu0 %v3294_v0 }
  0x25   :  { %3002 = vmatprep.subr.bf16.mxu1 %v3294_v0 }
  0x26   :  { %2699 = vmatmul.mubr.msk.f32.vlgmr.msra.gmra.mrb[0].mxu0 %vm68_vm1, %v57_v22 }
  0x27   :  { %3016 = vmatpush3.bf16.msra.mxu0 %v3350_v12 }
  0x28   :  { %3017 = vmatprep.subr.bf16.mxu0 %v3294_v0 }
  0x2b   :  { %3019 = vmatpush3.bf16.msra.mxu0 %v3357_v17 }
  0x2c   :  { %3020 = vmatprep.subr.bf16.mxu0 %v3294_v0 }
  0xf2   :  { %v283_v23 = vpop.f32.mrb[0].mxu1 }
  0xf3   :  { %v2720_v24 = vpop.f32.mrb[1].mxu1 }
  0xf9   :  { %v2700_v26 = vpop.f32.mrb[0].mxu0 }
  0xfa   :  { %v159_v27 = vpop.f32.mrb[1].mxu0  ;;  %v165_v60 = vadd.f32 %v2700_v26, %v3381_v25 }
  0xfb   :  { %v160_v28 = vadd.f32 %v3381_v25, %v159_v27 }
  0xfd   :  { %v287_v29 = vadd.f32 %v283_v23, %v160_v28 }
  0xff   :  { %v2485_v30 = vmul.f32 -1.442695, %v287_v29 }
 0x101   :  { %3167 = vpow2.f32 %v2485_v30 }
 0x10b   :  { %v3168_v31 = vpop.eup %3167 }
 0x10c   :  { %v291_v32 = vadd.f32 1.0, %v3168_v31 }
 0x10e   :  { %3169 = vrcp.f32 %v291_v32 }
 0x118   :  { %v3170_v33 = vpop.eup %3169 }
 0x119   :  { %v294_v34 = vmul.f32 2.0, %v3170_v33 }
 0x11b   :  { %v2486_v35 = vadd.f32 -1.0, %v294_v34  ;;  %v58_v34 = vld [vmem:[%s3737_s0 + $0x10] sm:$0xff] }
 0x11c   :  { %2701 = vmatprep.mubr.msk.f32.mxu0 %vm68_vm1, %v58_v34 }
 0x11d   :  { %302 = vrot.lane.b32.xlu0 %v2486_v35, %s3297_s16  ;;  %v59_v35 = vld [vmem:[%s3737_s0 + $0x18] sm:$0xff] }
 0x11e   :  { %2702 = vmatmul.mubr.msk.f32.gmra.mrb[2].mxu0 %vm68_vm1, %v59_v35 }
 0x121   :  { %297 = vrot.lane.b32.xlu0 %v209_v36, %s3298_s19  ;;  %v60_v36 = vld [vmem:[%s3737_s0 + $0x20] sm:$0xff] }
 0x122   :  { %2704 = vmatprep.mubr.msk.f32.mxu0 %vm68_vm1, %v60_v36 }
 0x18f   :  { %v303_v37 = vpop.permute.xlu0 %302 }
 0x190   :  { %v305_v38 = vmul.f32 %v3170_v33, %v303_v37  ;;  %v61_v37 = vld [vmem:[%s3737_s0 + $0x28] sm:$0xff] }
 0x191   :  { %2705 = vmatmul.mubr.msk.f32.gmra.mrb[4].mxu0 %vm68_vm1, %v61_v37 }
 0x192   :  { %307 = vrot.lane.b32.xlu1 %v305_v38, %s3298_s19  ;;  %v62_v38 = vld [vmem:[%s3737_s0 + $0x30] sm:$0xff] }
 0x193   :  { %v298_v39 = vpop.permute.xlu0 %297  ;;  %2707 = vmatprep.mubr.msk.f32.mxu0 %vm68_vm1, %v62_v38 }
 0x194   :  { %v300_v40 = vmul.f32 %v3170_v33, %v298_v39  ;;  %v63_v39 = vld [vmem:[%s3737_s0 + $0x38] sm:$0xff] }
 0x195   :  { %2708 = vmatmul.mubr.msk.f32.gmra.mrb[6].mxu0 %vm68_vm1, %v63_v39 }
 0x196   :  { %2762 = vmatprep.mubr.msk.f32.mxu0 %vm3295_vm0, %v3296_v1 }
 0x204   :  { %v308_v41 = vpop.permute.xlu1 %307 }
 0x205   :  { %v3390_v42 = vadd.f32 %v308_v41, %v300_v40 }
 0x207   :  { %3171 = vtanh.f32 %v3390_v42 }
 0x211   :  { %v3172_v43 = vpop.eup %3171 }
 0x212   :  { %313 = vrot.lane.b32.xlu1 %v3172_v43, %s3297_s16 }
 0x284   :  { %v314_v44 = vpop.permute.xlu1 %313 }
 0x285   :  { %v316_v45 = vmul.f32 %v3170_v33, %v314_v44 }
 0x287   :  { %319 = vrot.lane.b32.xlu0 %v316_v45, %s3298_s19  ;;  %v3476_v45 = vpop.f32.mrb[2].mxu0 }
 0x288   :  { %v169_v46 = vpop.f32.mrb[3].mxu0  ;;  %v175_v36 = vadd.f32 %v3476_v45, %v3381_v25 }
 0x289   :  { %v3478_v47 = vpop.f32.mrb[4].mxu0  ;;  %v170_v56 = vadd.f32 %v3381_v25, %v169_v46 }
 0x28a   :  { %v3480_v49 = vpop.f32.mrb[5].mxu0 }
 0x28b   :  { %v3482_v50 = vpop.f32.mrb[6].mxu0 }
 0x2f9   :  { %v320_v51 = vpop.permute.xlu0 %319 }
 0x2fa   :  { %2730 = vmatmul.mubr.msk.f32.vlgmr.msra.gmra.mrb[2].mxu1 %vm213_vm2, %v320_v51 }
 0x2fb   :  { %3004 = vmatpush3.bf16.msra.mxu1 %v3395_v48  ;;  %2740 = vmatprep.mubr.msk.f32.mxu1 %vm3295_vm0, %v3296_v1 }
 0x2fc   :  { %3005 = vmatprep.subr.bf16.mxu1 %v3294_v0 }
 0x2ff   :  { %3007 = vmatpush3.bf16.msra.mxu1 %v3399_v52 }
 0x300   :  { %3008 = vmatprep.subr.bf16.mxu1 %v3294_v0 }
 0x302   :  { %2741 = vmatmul.mubr.msk.f32.vlgmr.msra.gmra.mrb[4].mxu1 %vm213_vm2, %v320_v51  ;;  %v3484_v51 = vpop.f32.mrb[7].mxu0 }
 0x303   :  { %3010 = vmatpush3.bf16.msra.mxu1 %v3405_v55  ;;  %2751 = vmatprep.mubr.msk.f32.mxu1 %vm3295_vm0, %v3296_v1 }
 0x304   :  { %3011 = vmatprep.subr.bf16.mxu1 %v3294_v0 }
 0x307   :  { %3013 = vmatpush3.bf16.msra.mxu1 %v3410_v58 }
 0x308   :  { %3032 = vmatprep.subr.bf16.mxu1 %v3294_v0 }
 0x30a   :  { %2752 = vmatmul.mubr.msk.f32.vlgmr.msra.gmra.mrb[4].mxu1 %vm213_vm2, %v2482_v59 }
 0x30b   :  { %3034 = vmatpush3.bf16.msra.mxu1 %v3350_v12  ;;  %2795 = vmatprep.mubr.msk.f32.mxu1 %vm3295_vm0, %v3296_v1 }
 0x30c   :  { %3035 = vmatprep.subr.bf16.mxu1 %v3294_v0 }
 0x30f   :  { %3037 = vmatpush3.bf16.msra.mxu1 %v3357_v17 }
 0x310   :  { %3038 = vmatprep.subr.bf16.mxu1 %v3294_v0 }
 0x3cd   :  { %v389_v61 = vpop.f32.mrb[2].mxu1 }
 0x3ce   :  { %v393_v62 = vadd.f32 %v389_v61, %v165_v60  ;;  %v2731_v63 = vpop.f32.mrb[3].mxu1 }
 0x3d0   :  { %v2488_v2 = vmul.f32 -1.442695, %v393_v62 }
 0x3d2   :  { %3173 = vpow2.f32 %v2488_v2 }
 0x3dc   :  { %v3174_v4 = vpop.eup %3173 }
 0x3dd   :  { %v397_v5 = vadd.f32 1.0, %v3174_v4  ;;  %v562_v6 = vpop.f32.mrb[4].mxu1 }
 0x3de   :  { %v3134_v7 = vadd.f32 %v3428_v3, %v562_v6  ;;  %v2753_v8 = vpop.f32.mrb[5].mxu1 }
 0x3df   :  { %3175 = vrcp.f32 %v397_v5 }
 0x3e0   :  { %v2493_v9 = vmul.f32 -1.442695, %v3134_v7 }
 0x3e2   :  { %3177 = vpow2.f32 %v2493_v9 }
 0x3e9   :  { %v3176_v10 = vpop.eup %3175 }
 0x3ea   :  { %v400_v11 = vmul.f32 2.0, %v3176_v10  ;;  %v402_v26 = vmul.f32 %v3176_v10, %v3390_v42 }
 0x3ec   :  { %v3178_v13 = vpop.eup %3177  ;;  %v2489_v14 = vadd.f32 -1.0, %v400_v11 }
 0x3ed   :  { %v570_v15 = vadd.f32 1.0, %v3178_v13 }
 0x3ee   :  { %404 = vrot.lane.b32.xlu1 %v2489_v14, %s3297_s16 }
 0x3ef   :  { %3179 = vrcp.f32 %v570_v15 }
 0x3f9   :  { %v3180_v16 = vpop.eup %3179 }
 0x3fa   :  { %v573_v18 = vmul.f32 2.0, %v3180_v16 }
 0x3fc   :  { %v2494_v19 = vadd.f32 -1.0, %v573_v18 }
 0x3fe   :  { %581 = vrot.lane.b32.xlu0 %v2494_v19, %s3297_s16 }
 0x402   :  { %576 = vrot.lane.b32.xlu0 %v2483_v20, %s3298_s19 }
 0x460   :  { %v405_v21 = vpop.permute.xlu1 %404 }
 0x461   :  { %v407_v22 = vmul.f32 %v3176_v10, %v405_v21 }
 0x463   :  { %409 = vrot.lane.b32.xlu1 %v407_v22, %s3298_s19 }
 0x470   :  { %v582_v23 = vpop.permute.xlu0 %581 }
 0x471   :  { %v584_v24 = vmul.f32 %v3180_v16, %v582_v23 }
 0x473   :  { %586 = vrot.lane.b32.xlu1 %v584_v24, %s3298_s19 }
 0x474   :  { %v577_v29 = vpop.permute.xlu0 %576 }
 0x475   :  { %v579_v31 = vmul.f32 %v3180_v16, %v577_v29 }
 0x4d5   :  { %v410_v27 = vpop.permute.xlu1 %409 }
 0x4d6   :  { %v3440_v28 = vadd.f32 %v410_v27, %v402_v26 }
 0x4d8   :  { %3181 = vtanh.f32 %v3440_v28 }
 0x4e2   :  { %v3182_v30 = vpop.eup %3181 }
 0x4e3   :  { %415 = vrot.lane.b32.xlu0 %v3182_v30, %s3297_s16 }
 0x4e5   :  { %v587_v32 = vpop.permute.xlu1 %586 }
 0x4e6   :  { %v3444_v33 = vadd.f32 %v587_v32, %v579_v31 }
 0x4e8   :  { %3183 = vtanh.f32 %v3444_v33 }
 0x4f2   :  { %v3184_v40 = vpop.eup %3183 }
 0x4f3   :  { %592 = vrot.lane.b32.xlu1 %v3184_v40, %s3297_s16 }
 0x555   :  { %v416_v41 = vpop.permute.xlu0 %415 }
 0x556   :  { %v418_v42 = vmul.f32 %v3176_v10, %v416_v41 }
 0x558   :  { %598 = vrot.lane.b32.xlu0 %v418_v42, %s3298_s19 }
 0x565   :  { %v593_v43 = vpop.permute.xlu1 %592 }
 0x566   :  { %v595_v44 = vmul.f32 %v3180_v16, %v593_v43 }
 0x568   :  { %769 = vrot.lane.b32.xlu1 %v595_v44, %s3298_s19 }
 0x5ca   :  { %v599_v53 = vpop.permute.xlu0 %598 }
 0x5cb   :  { %2763 = vmatmul.mubr.msk.f32.vlgmr.msra.gmra.mrb[8].mxu0 %vm213_vm2, %v599_v53 }
 0x5cc   :  { %3022 = vmatpush3.bf16.msra.mxu0 %v3395_v48  ;;  %2773 = vmatprep.mubr.msk.f32.mxu0 %vm3295_vm0, %v3296_v1 }
 0x5cd   :  { %3023 = vmatprep.subr.bf16.mxu0 %v3294_v0 }
 0x5d0   :  { %3025 = vmatpush3.bf16.msra.mxu0 %v3399_v52 }
 0x5d1   :  { %3026 = vmatprep.subr.bf16.mxu0 %v3294_v0 }
 0x5d3   :  { %2774 = vmatmul.mubr.msk.f32.vlgmr.msra.gmra.mrb[10].mxu0 %vm213_vm2, %v599_v53 }
 0x5d4   :  { %3028 = vmatpush3.bf16.msra.mxu0 %v3405_v55  ;;  %2784 = vmatprep.mubr.msk.f32.mxu0 %vm3295_vm0, %v3296_v1 }
 0x5d5   :  { %3029 = vmatprep.subr.bf16.mxu0 %v3294_v0 }
 0x5d8   :  { %3031 = vmatpush3.bf16.msra.mxu0 %v3410_v58 }
 0x5d9   :  { %3050 = vmatprep.subr.bf16.mxu0 %v3294_v0 }
 0x5da   :  { %v770_v54 = vpop.permute.xlu1 %769 }
 0x5db   :  { %2785 = vmatmul.mubr.msk.f32.vlgmr.msra.gmra.mrb[10].mxu0 %vm213_vm2, %v770_v54 }
 0x5dc   :  { %3052 = vmatpush3.bf16.msra.mxu0 %v3350_v12  ;;  %2828 = vmatprep.mubr.msk.f32.mxu0 %vm3295_vm0, %v3296_v1 }
 0x5dd   :  { %3053 = vmatprep.subr.bf16.mxu0 %v3294_v0 }
 0x5e0   :  { %3055 = vmatpush3.bf16.msra.mxu0 %v3357_v17 }
 0x5e1   :  { %3056 = vmatprep.subr.bf16.mxu0 %v3294_v0 }
 0x69e   :  { %v668_v57 = vpop.f32.mrb[8].mxu0 }
 0x69f   :  { %v672_v59 = vadd.f32 %v668_v57, %v170_v56  ;;  %v2764_v60 = vpop.f32.mrb[9].mxu0 }
 0x6a1   :  { %v2496_v61 = vmul.f32 -1.442695, %v672_v59 }
 0x6a3   :  { %3185 = vpow2.f32 %v2496_v61 }
 0x6ad   :  { %v3186_v62 = vpop.eup %3185 }
 0x6ae   :  { %v676_v63 = vadd.f32 1.0, %v3186_v62  ;;  %v839_v2 = vpop.f32.mrb[10].mxu0 }
 0x6af   :  { %v3135_v4 = vadd.f32 %v3428_v3, %v839_v2  ;;  %v2786_v5 = vpop.f32.mrb[11].mxu0 }
 0x6b0   :  { %3187 = vrcp.f32 %v676_v63 }
 0x6b1   :  { %v2500_v6 = vmul.f32 -1.442695, %v3135_v4 }
 0x6b3   :  { %3189 = vpow2.f32 %v2500_v6 }
 0x6ba   :  { %v3188_v7 = vpop.eup %3187 }
 0x6bb   :  { %v679_v8 = vmul.f32 2.0, %v3188_v7  ;;  %v681_v21 = vmul.f32 %v3188_v7, %v3440_v28 }
 0x6bd   :  { %v3190_v9 = vpop.eup %3189  ;;  %v2497_v10 = vadd.f32 -1.0, %v679_v8 }
 0x6be   :  { %v847_v11 = vadd.f32 1.0, %v3190_v9 }
 0x6bf   :  { %683 = vrot.lane.b32.xlu0 %v2497_v10, %s3297_s16 }
 0x6c0   :  { %3191 = vrcp.f32 %v847_v11 }
 0x6ca   :  { %v3192_v13 = vpop.eup %3191 }
 0x6cb   :  { %v850_v14 = vmul.f32 2.0, %v3192_v13  ;;  %v852_v26 = vmul.f32 %v3192_v13, %v3444_v33 }
 0x6cd   :  { %v2501_v15 = vadd.f32 -1.0, %v850_v14 }
 0x6cf   :  { %854 = vrot.lane.b32.xlu1 %v2501_v15, %s3297_s16 }
 0x731   :  { %v684_v16 = vpop.permute.xlu0 %683 }
 0x732   :  { %v686_v18 = vmul.f32 %v3188_v7, %v684_v16 }
 0x734   :  { %688 = vrot.lane.b32.xlu0 %v686_v18, %s3298_s19 }
 0x741   :  { %v855_v19 = vpop.permute.xlu1 %854 }
 0x742   :  { %v857_v20 = vmul.f32 %v3192_v13, %v855_v19 }
 0x744   :  { %859 = vrot.lane.b32.xlu1 %v857_v20, %s3298_s19 }
 0x7a6   :  { %v689_v22 = vpop.permute.xlu0 %688 }
 0x7a7   :  { %v3514_v23 = vadd.f32 %v689_v22, %v681_v21  ;;  %v180_v22 = vadd.f32 %v3381_v25, %v3480_v49 }
 0x7a9   :  { %3193 = vtanh.f32 %v3514_v23 }
 0x7b3   :  { %v3194_v24 = vpop.eup %3193 }
 0x7b4   :  { %694 = vrot.lane.b32.xlu0 %v3194_v24, %s3297_s16 }
 0x7b6   :  { %v860_v27 = vpop.permute.xlu1 %859 }
 0x7b7   :  { %v3519_v29 = vadd.f32 %v860_v27, %v852_v26 }
 0x7b9   :  { %3195 = vtanh.f32 %v3519_v29 }
 0x7c3   :  { %v3196_v30 = vpop.eup %3195 }
 0x7c4   :  { %865 = vrot.lane.b32.xlu1 %v3196_v30, %s3297_s16 }
 0x826   :  { %v695_v31 = vpop.permute.xlu0 %694 }
 0x827   :  { %v697_v28 = vmul.f32 %v3188_v7, %v695_v31 }
 0x829   :  { %871 = vrot.lane.b32.xlu0 %v697_v28, %s3298_s19 }
 0x836   :  { %v866_v32 = vpop.permute.xlu1 %865 }
 0x837   :  { %v868_v34 = vmul.f32 %v3192_v13, %v866_v32 }
 0x839   :  { %1042 = vrot.lane.b32.xlu1 %v868_v34, %s3298_s19 }
 0x89b   :  { %v872_v35 = vpop.permute.xlu0 %871 }
 0x89c   :  { %2796 = vmatmul.mubr.msk.f32.vlgmr.msra.gmra.mrb[6].mxu1 %vm213_vm2, %v872_v35 }
 0x89d   :  { %3040 = vmatpush3.bf16.msra.mxu1 %v3395_v48  ;;  %2806 = vmatprep.mubr.msk.f32.mxu1 %vm3295_vm0, %v3296_v1 }
 0x89e   :  { %3041 = vmatprep.subr.bf16.mxu1 %v3294_v0 }
 0x8a1   :  { %3043 = vmatpush3.bf16.msra.mxu1 %v3399_v52 }
 0x8a2   :  { %3044 = vmatprep.subr.bf16.mxu1 %v3294_v0 }
 0x8a4   :  { %2807 = vmatmul.mubr.msk.f32.vlgmr.msra.gmra.mrb[8].mxu1 %vm213_vm2, %v872_v35 }
 0x8a5   :  { %3046 = vmatpush3.bf16.msra.mxu1 %v3405_v55  ;;  %2817 = vmatprep.mubr.msk.f32.mxu1 %vm3295_vm0, %v3296_v1 }
 0x8a6   :  { %3047 = vmatprep.subr.bf16.mxu1 %v3294_v0 }
 0x8a9   :  { %3049 = vmatpush3.bf16.msra.mxu1 %v3410_v58 }
 0x8aa   :  { %3068 = vmatprep.subr.bf16.mxu1 %v3294_v0 }
 0x8ab   :  { %v1043_v33 = vpop.permute.xlu1 %1042 }
 0x8ac   :  { %2818 = vmatmul.mubr.msk.f32.vlgmr.msra.gmra.mrb[8].mxu1 %vm213_vm2, %v1043_v33 }
 0x8ad   :  { %3070 = vmatpush3.bf16.msra.mxu1 %v3350_v12  ;;  %2861 = vmatprep.mubr.msk.f32.mxu1 %vm3295_vm0, %v3296_v1 }
 0x8ae   :  { %3071 = vmatprep.subr.bf16.mxu1 %v3294_v0 }
 0x8b1   :  { %3073 = vmatpush3.bf16.msra.mxu1 %v3357_v17 }
 0x8b2   :  { %3074 = vmatprep.subr.bf16.mxu1 %v3294_v0 }
 0x96f   :  { %v941_v37 = vpop.f32.mrb[6].mxu1 }
 0x970   :  { %v945_v38 = vadd.f32 %v941_v37, %v175_v36  ;;  %v2797_v39 = vpop.f32.mrb[7].mxu1 }
 0x972   :  { %v2503_v40 = vmul.f32 -1.442695, %v945_v38 }
 0x974   :  { %3197 = vpow2.f32 %v2503_v40 }
 0x97e   :  { %v3198_v41 = vpop.eup %3197 }
 0x97f   :  { %v949_v42 = vadd.f32 1.0, %v3198_v41  ;;  %v1112_v43 = vpop.f32.mrb[8].mxu1 }
 0x980   :  { %v3136_v44 = vadd.f32 %v3428_v3, %v1112_v43  ;;  %v2819_v46 = vpop.f32.mrb[9].mxu1 }
 0x981   :  { %3199 = vrcp.f32 %v949_v42 }
 0x982   :  { %v2507_v53 = vmul.f32 -1.442695, %v3136_v44 }
 0x984   :  { %3201 = vpow2.f32 %v2507_v53 }
 0x98b   :  { %v3200_v54 = vpop.eup %3199 }
 0x98c   :  { %v952_v56 = vmul.f32 2.0, %v3200_v54  ;;  %v954_v6 = vmul.f32 %v3200_v54, %v3514_v23 }
 0x98e   :  { %v3202_v57 = vpop.eup %3201  ;;  %v2504_v59 = vadd.f32 -1.0, %v952_v56 }
 0x98f   :  { %v1120_v60 = vadd.f32 1.0, %v3202_v57 }
 0x990   :  { %956 = vrot.lane.b32.xlu0 %v2504_v59, %s3297_s16 }
 0x991   :  { %3203 = vrcp.f32 %v1120_v60 }
 0x99b   :  { %v3204_v45 = vpop.eup %3203 }
 0x99c   :  { %v1123_v61 = vmul.f32 2.0, %v3204_v45  ;;  %v1125_v10 = vmul.f32 %v3204_v45, %v3519_v29 }
 0x99e   :  { %v2508_v62 = vadd.f32 -1.0, %v1123_v61 }
 0x9a0   :  { %1127 = vrot.lane.b32.xlu1 %v2508_v62, %s3297_s16 }
 0xa02   :  { %v957_v63 = vpop.permute.xlu0 %956 }
 0xa03   :  { %v959_v2 = vmul.f32 %v3200_v54, %v957_v63 }
 0xa05   :  { %961 = vrot.lane.b32.xlu0 %v959_v2, %s3298_s19 }
 0xa12   :  { %v1128_v4 = vpop.permute.xlu1 %1127 }
 0xa13   :  { %v1130_v5 = vmul.f32 %v3204_v45, %v1128_v4 }
 0xa15   :  { %1132 = vrot.lane.b32.xlu1 %v1130_v5, %s3298_s19 }
 0xa77   :  { %v962_v7 = vpop.permute.xlu0 %961 }
 0xa78   :  { %v3554_v8 = vadd.f32 %v962_v7, %v954_v6  ;;  %v185_v6 = vadd.f32 %v3478_v47, %v3381_v25 }
 0xa7a   :  { %3205 = vtanh.f32 %v3554_v8 }
 0xa84   :  { %v3206_v9 = vpop.eup %3205 }
 0xa85   :  { %967 = vrot.lane.b32.xlu0 %v3206_v9, %s3297_s16 }
 0xa87   :  { %v1133_v11 = vpop.permute.xlu1 %1132 }
 0xa88   :  { %v3559_v13 = vadd.f32 %v1133_v11, %v1125_v10 }
 0xa8a   :  { %3207 = vtanh.f32 %v3559_v13 }
 0xa94   :  { %v3208_v14 = vpop.eup %3207 }
 0xa95   :  { %1138 = vrot.lane.b32.xlu1 %v3208_v14, %s3297_s16 }
 0xaf7   :  { %v968_v15 = vpop.permute.xlu0 %967 }
 0xaf8   :  { %v970_v16 = vmul.f32 %v3200_v54, %v968_v15 }
 0xafa   :  { %1144 = vrot.lane.b32.xlu0 %v970_v16, %s3298_s19 }
 0xb07   :  { %v1139_v18 = vpop.permute.xlu1 %1138 }
 0xb08   :  { %v1141_v19 = vmul.f32 %v3204_v45, %v1139_v18 }
 0xb0a   :  { %1315 = vrot.lane.b32.xlu1 %v1141_v19, %s3298_s19 }
 0xb6c   :  { %v1145_v20 = vpop.permute.xlu0 %1144 }
 0xb6d   :  { %2829 = vmatmul.mubr.msk.f32.vlgmr.msra.gmra.mrb[12].mxu0 %vm213_vm2, %v1145_v20 }
 0xb6e   :  { %3058 = vmatpush3.bf16.msra.mxu0 %v3395_v48  ;;  %2839 = vmatprep.mubr.msk.f32.mxu0 %vm3295_vm0, %v3296_v1 }
 0xb6f   :  { %3059 = vmatprep.subr.bf16.mxu0 %v3294_v0 }
 0xb72   :  { %3061 = vmatpush3.bf16.msra.mxu0 %v3399_v52 }
 0xb73   :  { %3062 = vmatprep.subr.bf16.mxu0 %v3294_v0 }
 0xb75   :  { %2840 = vmatmul.mubr.msk.f32.vlgmr.msra.gmra.mrb[14].mxu0 %vm213_vm2, %v1145_v20 }
 0xb76   :  { %3064 = vmatpush3.bf16.msra.mxu0 %v3405_v55  ;;  %2850 = vmatprep.mubr.msk.f32.mxu0 %vm3295_vm0, %v3296_v1 }
 0xb77   :  { %3065 = vmatprep.subr.bf16.mxu0 %v3294_v0 }
 0xb7a   :  { %3067 = vmatpush3.bf16.msra.mxu0 %v3410_v58 }
 0xb7b   :  { %3086 = vmatprep.subr.bf16.mxu0 %v3294_v0 }
 0xb7c   :  { %v1316_v21 = vpop.permute.xlu1 %1315 }
 0xb7d   :  { %2851 = vmatmul.mubr.msk.f32.vlgmr.msra.gmra.mrb[14].mxu0 %vm213_vm2, %v1316_v21 }
 0xb7e   :  { %3088 = vmatpush3.bf16.msra.mxu0 %v3350_v12  ;;  %2894 = vmatprep.mubr.msk.f32.mxu0 %vm3295_vm0, %v3296_v1 }
 0xb7f   :  { %3089 = vmatprep.subr.bf16.mxu0 %v3294_v0 }
 0xb82   :  { %3091 = vmatpush3.bf16.msra.mxu0 %v3357_v17 }
 0xb83   :  { %3092 = vmatprep.subr.bf16.mxu0 %v3294_v0 }
 0xc40   :  { %v1214_v23 = vpop.f32.mrb[12].mxu0 }
 0xc41   :  { %v1218_v24 = vadd.f32 %v1214_v23, %v180_v22  ;;  %v2830_v26 = vpop.f32.mrb[13].mxu0 }
 0xc43   :  { %v2510_v27 = vmul.f32 -1.442695, %v1218_v24 }
 0xc45   :  { %3209 = vpow2.f32 %v2510_v27 }
 0xc4f   :  { %v3210_v29 = vpop.eup %3209 }
 0xc50   :  { %v1222_v30 = vadd.f32 1.0, %v3210_v29  ;;  %v1385_v31 = vpop.f32.mrb[14].mxu0 }
 0xc51   :  { %v3137_v28 = vadd.f32 %v3428_v3, %v1385_v31  ;;  %v2852_v32 = vpop.f32.mrb[15].mxu0 }
 0xc52   :  { %3211 = vrcp.f32 %v1222_v30 }
 0xc53   :  { %v2514_v34 = vmul.f32 -1.442695, %v3137_v28 }
 0xc55   :  { %3213 = vpow2.f32 %v2514_v34 }
 0xc5c   :  { %v3212_v35 = vpop.eup %3211 }
 0xc5d   :  { %v1225_v33 = vmul.f32 2.0, %v3212_v35  ;;  %v1227_v46 = vmul.f32 %v3212_v35, %v3554_v8 }
 0xc5f   :  { %v3214_v36 = vpop.eup %3213  ;;  %v2511_v37 = vadd.f32 -1.0, %v1225_v33 }
 0xc60   :  { %v1393_v38 = vadd.f32 1.0, %v3214_v36 }
 0xc61   :  { %1229 = vrot.lane.b32.xlu0 %v2511_v37, %s3297_s16 }
 0xc62   :  { %3215 = vrcp.f32 %v1393_v38 }
 0xc6c   :  { %v3216_v49 = vpop.eup %3215 }
 0xc6d   :  { %v1396_v39 = vmul.f32 2.0, %v3216_v49  ;;  %v1398_v57 = vmul.f32 %v3216_v49, %v3559_v13 }
 0xc6f   :  { %v2515_v40 = vadd.f32 -1.0, %v1396_v39 }
 0xc71   :  { %1400 = vrot.lane.b32.xlu1 %v2515_v40, %s3297_s16 }
 0xcd3   :  { %v1230_v41 = vpop.permute.xlu0 %1229 }
 0xcd4   :  { %v1232_v42 = vmul.f32 %v3212_v35, %v1230_v41 }
 0xcd6   :  { %1234 = vrot.lane.b32.xlu0 %v1232_v42, %s3298_s19  ;;  %v190_v42 = vadd.f32 %v3381_v25, %v3484_v51 }
 0xce3   :  { %v1401_v43 = vpop.permute.xlu1 %1400 }
 0xce4   :  { %v1403_v44 = vmul.f32 %v3216_v49, %v1401_v43 }
 0xce6   :  { %1405 = vrot.lane.b32.xlu1 %v1403_v44, %s3298_s19 }
 0xd48   :  { %v1235_v53 = vpop.permute.xlu0 %1234 }
 0xd49   :  { %v3594_v54 = vadd.f32 %v1235_v53, %v1227_v46 }
 0xd4b   :  { %3217 = vtanh.f32 %v3594_v54 }
 0xd55   :  { %v3218_v56 = vpop.eup %3217 }
 0xd56   :  { %1240 = vrot.lane.b32.xlu0 %v3218_v56, %s3297_s16 }
 0xd58   :  { %v1406_v59 = vpop.permute.xlu1 %1405 }
 0xd59   :  { %v3599_v60 = vadd.f32 %v1406_v59, %v1398_v57 }
 0xd5b   :  { %3219 = vtanh.f32 %v3599_v60 }
 0xd65   :  { %v3220_v45 = vpop.eup %3219 }
 0xd66   :  { %1411 = vrot.lane.b32.xlu1 %v3220_v45, %s3297_s16 }
 0xdc8   :  { %v1241_v61 = vpop.permute.xlu0 %1240 }
 0xdc9   :  { %v1243_v62 = vmul.f32 %v3212_v35, %v1241_v61 }
 0xdcb   :  { %1417 = vrot.lane.b32.xlu0 %v1243_v62, %s3298_s19 }
 0xdd8   :  { %v1412_v63 = vpop.permute.xlu1 %1411 }
 0xdd9   :  { %v1414_v2 = vmul.f32 %v3216_v49, %v1412_v63 }
 0xddb   :  { %1588 = vrot.lane.b32.xlu1 %v1414_v2, %s3298_s19 }
 0xe3d   :  { %v1418_v4 = vpop.permute.xlu0 %1417 }
 0xe3e   :  { %2862 = vmatmul.mubr.msk.f32.vlgmr.msra.gmra.mrb[10].mxu1 %vm213_vm2, %v1418_v4 }
 0xe3f   :  { %3076 = vmatpush3.bf16.msra.mxu1 %v3395_v48  ;;  %2872 = vmatprep.mubr.msk.f32.mxu1 %vm3295_vm0, %v3296_v1 }
 0xe40   :  { %3077 = vmatprep.subr.bf16.mxu1 %v3294_v0 }
 0xe43   :  { %3079 = vmatpush3.bf16.msra.mxu1 %v3399_v52 }
 0xe44   :  { %3080 = vmatprep.subr.bf16.mxu1 %v3294_v0 }
 0xe46   :  { %2873 = vmatmul.mubr.msk.f32.vlgmr.msra.gmra.mrb[12].mxu1 %vm213_vm2, %v1418_v4 }
 0xe47   :  { %3082 = vmatpush3.bf16.msra.mxu1 %v3405_v55  ;;  %2883 = vmatprep.mubr.msk.f32.mxu1 %vm3295_vm0, %v3296_v1 }
 0xe48   :  { %3083 = vmatprep.subr.bf16.mxu1 %v3294_v0 }
 0xe4b   :  { %3085 = vmatpush3.bf16.msra.mxu1 %v3410_v58 }
 0xe4c   :  { %3104 = vmatprep.subr.bf16.mxu1 %v3294_v0 }
 0xe4d   :  { %v1589_v5 = vpop.permute.xlu1 %1588 }
 0xe4e   :  { %2884 = vmatmul.mubr.msk.f32.vlgmr.msra.gmra.mrb[12].mxu1 %vm213_vm2, %v1589_v5 }
 0xe4f   :  { %3106 = vmatpush3.bf16.msra.mxu1 %v3350_v12  ;;  %2927 = vmatprep.mubr.msk.f32.mxu1 %vm3295_vm0, %v3296_v1 }
 0xe50   :  { %3107 = vmatprep.subr.bf16.mxu1 %v3294_v0 }
 0xe53   :  { %3109 = vmatpush3.bf16.msra.mxu1 %v3357_v17 }
 0xe54   :  { %3110 = vmatprep.subr.bf16.mxu1 %v3294_v0 }
 0xf11   :  { %v1487_v7 = vpop.f32.mrb[10].mxu1 }
 0xf12   :  { %v1491_v8 = vadd.f32 %v1487_v7, %v185_v6  ;;  %v2863_v9 = vpop.f32.mrb[11].mxu1 }
 0xf14   :  { %v2517_v10 = vmul.f32 -1.442695, %v1491_v8 }
 0xf16   :  { %3221 = vpow2.f32 %v2517_v10 }
 0xf20   :  { %v3222_v11 = vpop.eup %3221 }
 0xf21   :  { %v1495_v13 = vadd.f32 1.0, %v3222_v11  ;;  %v1658_v12 = vpop.f32.mrb[12].mxu1 }
 0xf22   :  { %v3138_v14 = vadd.f32 %v3428_v3, %v1658_v12  ;;  %v2885_v15 = vpop.f32.mrb[13].mxu1 }
 0xf23   :  { %3223 = vrcp.f32 %v1495_v13 }
 0xf24   :  { %v2521_v16 = vmul.f32 -1.442695, %v3138_v14 }
 0xf26   :  { %3225 = vpow2.f32 %v2521_v16 }
 0xf2d   :  { %v3224_v17 = vpop.eup %3223 }
 0xf2e   :  { %v1498_v18 = vmul.f32 2.0, %v3224_v17  ;;  %v1500_v30 = vmul.f32 %v3224_v17, %v3594_v54 }
 0xf30   :  { %v3226_v19 = vpop.eup %3225  ;;  %v2518_v20 = vadd.f32 -1.0, %v1498_v18 }
 0xf31   :  { %v1666_v21 = vadd.f32 1.0, %v3226_v19 }
 0xf32   :  { %1502 = vrot.lane.b32.xlu0 %v2518_v20, %s3297_s16 }
 0xf33   :  { %3227 = vrcp.f32 %v1666_v21 }
 0xf3d   :  { %v3228_v47 = vpop.eup %3227 }
 0xf3e   :  { %v1669_v22 = vmul.f32 2.0, %v3228_v47  ;;  %v1671_v34 = vmul.f32 %v3228_v47, %v3599_v60 }
 0xf40   :  { %v2522_v23 = vadd.f32 -1.0, %v1669_v22 }
 0xf42   :  { %1673 = vrot.lane.b32.xlu1 %v2522_v23, %s3297_s16  ;;  %v195_v23 = vadd.f32 %v3482_v50, %v3381_v25 }
 0xfa4   :  { %v1503_v24 = vpop.permute.xlu0 %1502 }
 0xfa5   :  { %v1505_v26 = vmul.f32 %v3224_v17, %v1503_v24 }
 0xfa7   :  { %1507 = vrot.lane.b32.xlu0 %v1505_v26, %s3298_s19 }
 0xfb4   :  { %v1674_v27 = vpop.permute.xlu1 %1673 }
 0xfb5   :  { %v1676_v29 = vmul.f32 %v3228_v47, %v1674_v27 }
 0xfb7   :  { %1678 = vrot.lane.b32.xlu1 %v1676_v29, %s3298_s19 }
0x1019   :  { %v1508_v31 = vpop.permute.xlu0 %1507 }
0x101a   :  { %v3634_v28 = vadd.f32 %v1508_v31, %v1500_v30 }
0x101c   :  { %3229 = vtanh.f32 %v3634_v28 }
0x1026   :  { %v3230_v32 = vpop.eup %3229 }
0x1027   :  { %1513 = vrot.lane.b32.xlu0 %v3230_v32, %s3297_s16 }
0x1029   :  { %v1679_v35 = vpop.permute.xlu1 %1678 }
0x102a   :  { %v3639_v33 = vadd.f32 %v1679_v35, %v1671_v34 }
0x102c   :  { %3231 = vtanh.f32 %v3639_v33 }
0x1036   :  { %v3232_v36 = vpop.eup %3231 }
0x1037   :  { %1684 = vrot.lane.b32.xlu1 %v3232_v36, %s3297_s16 }
0x1099   :  { %v1514_v37 = vpop.permute.xlu0 %1513 }
0x109a   :  { %v1516_v38 = vmul.f32 %v3224_v17, %v1514_v37 }
0x109c   :  { %1690 = vrot.lane.b32.xlu0 %v1516_v38, %s3298_s19 }
0x10a9   :  { %v1685_v49 = vpop.permute.xlu1 %1684 }
0x10aa   :  { %v1687_v39 = vmul.f32 %v3228_v47, %v1685_v49 }
0x10ac   :  { %1861 = vrot.lane.b32.xlu1 %v1687_v39, %s3298_s19 }
0x110e   :  { %v1691_v40 = vpop.permute.xlu0 %1690 }
0x110f   :  { %2895 = vmatmul.mubr.msk.f32.vlgmr.msra.gmra.mrb[16].mxu0 %vm213_vm2, %v1691_v40 }
0x1110   :  { %3094 = vmatpush3.bf16.msra.mxu0 %v3395_v48  ;;  %2905 = vmatprep.mubr.msk.f32.mxu0 %vm3295_vm0, %v3296_v1 }
0x1111   :  { %3095 = vmatprep.subr.bf16.mxu0 %v3294_v0 }
0x1114   :  { %3097 = vmatpush3.bf16.msra.mxu0 %v3399_v52 }
0x1115   :  { %3098 = vmatprep.subr.bf16.mxu0 %v3294_v0 }
0x1117   :  { %2906 = vmatmul.mubr.msk.f32.vlgmr.msra.gmra.mrb[18].mxu0 %vm213_vm2, %v1691_v40 }
0x1118   :  { %3100 = vmatpush3.bf16.msra.mxu0 %v3405_v55  ;;  %2916 = vmatprep.mubr.msk.f32.mxu0 %vm3295_vm0, %v3296_v1 }
0x1119   :  { %3101 = vmatprep.subr.bf16.mxu0 %v3294_v0 }
0x111c   :  { %3103 = vmatpush3.bf16.msra.mxu0 %v3410_v58 }
0x111d   :  { %3122 = vmatprep.subr.bf16.mxu0 %v3294_v0 }
0x111e   :  { %v1862_v41 = vpop.permute.xlu1 %1861 }
0x111f   :  { %2917 = vmatmul.mubr.msk.f32.vlgmr.msra.gmra.mrb[18].mxu0 %vm213_vm2, %v1862_v41 }
0x1120   :  { %3124 = vmatpush3.bf16.msra.mxu0 %v3395_v48  ;;  %2960 = vmatprep.mubr.msk.f32.mxu0 %vm3295_vm0, %v3296_v1 }
0x1121   :  { %3125 = vmatprep.subr.bf16.mxu0 %v3294_v0 }
0x1124   :  { %3127 = vmatpush3.bf16.msra.mxu0 %v3399_v52 }
0x1125   :  { %3128 = vmatprep.subr.bf16.mxu0 %v3294_v0 }
0x11e2   :  { %v1760_v43 = vpop.f32.mrb[16].mxu0 }
0x11e3   :  { %v1764_v44 = vadd.f32 %v1760_v43, %v190_v42  ;;  %v2896_v46 = vpop.f32.mrb[17].mxu0 }
0x11e5   :  { %v2524_v53 = vmul.f32 -1.442695, %v1764_v44 }
0x11e7   :  { %3233 = vpow2.f32 %v2524_v53 }
0x11f1   :  { %v3234_v54 = vpop.eup %3233 }
0x11f2   :  { %v1768_v56 = vadd.f32 1.0, %v3234_v54  ;;  %v1931_v57 = vpop.f32.mrb[18].mxu0 }
0x11f3   :  { %v3139_v59 = vadd.f32 %v3428_v3, %v1931_v57  ;;  %v2918_v60 = vpop.f32.mrb[19].mxu0 }
0x11f4   :  { %3235 = vrcp.f32 %v1768_v56 }
0x11f5   :  { %v2528_v45 = vmul.f32 -1.442695, %v3139_v59 }
0x11f7   :  { %3237 = vpow2.f32 %v2528_v45 }
0x11fe   :  { %v3236_v61 = vpop.eup %3235 }
0x11ff   :  { %v1771_v62 = vmul.f32 2.0, %v3236_v61  ;;  %v1773_v11 = vmul.f32 %v3236_v61, %v3634_v28 }
0x1201   :  { %v3238_v63 = vpop.eup %3237  ;;  %v2525_v2 = vadd.f32 -1.0, %v1771_v62 }
0x1202   :  { %v1939_v4 = vadd.f32 1.0, %v3238_v63 }
0x1203   :  { %1775 = vrot.lane.b32.xlu0 %v2525_v2, %s3297_s16 }
0x1204   :  { %3239 = vrcp.f32 %v1939_v4 }
0x120e   :  { %v3240_v51 = vpop.eup %3239 }
0x120f   :  { %v1942_v5 = vmul.f32 2.0, %v3240_v51  ;;  %v1944_v15 = vmul.f32 %v3240_v51, %v3639_v33 }
0x1211   :  { %v2529_v6 = vadd.f32 -1.0, %v1942_v5 }
0x1213   :  { %1946 = vrot.lane.b32.xlu1 %v2529_v6, %s3297_s16 }
0x1275   :  { %v1776_v7 = vpop.permute.xlu0 %1775 }
0x1276   :  { %v1778_v8 = vmul.f32 %v3236_v61, %v1776_v7 }
0x1278   :  { %1780 = vrot.lane.b32.xlu0 %v1778_v8, %s3298_s19 }
0x1285   :  { %v1947_v9 = vpop.permute.xlu1 %1946 }
0x1286   :  { %v1949_v10 = vmul.f32 %v3240_v51, %v1947_v9 }
0x1288   :  { %1951 = vrot.lane.b32.xlu1 %v1949_v10, %s3298_s19 }
0x12ea   :  { %v1781_v13 = vpop.permute.xlu0 %1780 }
0x12eb   :  { %v1783_v12 = vadd.f32 %v1781_v13, %v1773_v11 }
0x12ed   :  { %3241 = vtanh.f32 %v1783_v12 }
0x12f7   :  { %v3242_v14 = vpop.eup %3241 }
0x12f8   :  { %1786 = vrot.lane.b32.xlu0 %v3242_v14, %s3297_s16 }
0x12fa   :  { %v1952_v16 = vpop.permute.xlu1 %1951 }
0x12fb   :  { %v1954_v17 = vadd.f32 %v1952_v16, %v1944_v15 }
0x12fd   :  { %3243 = vtanh.f32 %v1954_v17 }
0x1307   :  { %v3244_v18 = vpop.eup %3243 }
0x1308   :  { %1957 = vrot.lane.b32.xlu1 %v3244_v18, %s3297_s16 }
0x136a   :  { %v1787_v19 = vpop.permute.xlu0 %1786 }
0x136b   :  { %v1789_v20 = vmul.f32 %v3236_v61, %v1787_v19 }
0x136d   :  { %1963 = vrot.lane.b32.xlu0 %v1789_v20, %s3298_s19 }
0x137a   :  { %v1958_v21 = vpop.permute.xlu1 %1957 }
0x137b   :  { %v1960_v47 = vmul.f32 %v3240_v51, %v1958_v21 }
0x137d   :  { %2134 = vrot.lane.b32.xlu1 %v1960_v47, %s3298_s19 }
0x13df   :  { %v1964_v22 = vpop.permute.xlu0 %1963 }
0x13e0   :  { %2928 = vmatmul.mubr.msk.f32.vlgmr.msra.gmra.mrb[14].mxu1 %vm213_vm2, %v1964_v22 }
0x13e1   :  { %3112 = vmatpush3.bf16.msra.mxu1 %v3395_v48  ;;  %2938 = vmatprep.mubr.msk.f32.mxu1 %vm3295_vm0, %v3296_v1 }
0x13e2   :  { %3113 = vmatprep.subr.bf16.mxu1 %v3294_v0 }
0x13e5   :  { %3115 = vmatpush3.bf16.msra.mxu1 %v3399_v52 }
0x13e6   :  { %3116 = vmatprep.subr.bf16.mxu1 %v3294_v0 }
0x13e8   :  { %2939 = vmatmul.mubr.msk.f32.vlgmr.msra.gmra.mrb[16].mxu1 %vm213_vm2, %v1964_v22  ;;  %v2544_v22 = vld [vmem:[#allocation3 + $0xb1] ss:$0 sm:$0xff] }
0x13e9   :  { %3118 = vmatpush3.bf16.msra.mxu1 %v3405_v55  ;;  %2949 = vmatprep.mubr.msk.f32.mxu1 %vm3295_vm0, %v3296_v1 }
0x13ea   :  { %3119 = vmatprep.subr.bf16.mxu1 %v3294_v0 }
0x13ed   :  { %3121 = vmatpush3.bf16.msra.mxu1 %v3410_v58 }
0x13ef   :  { %v2135_v48 = vpop.permute.xlu1 %2134 }
0x13f0   :  { %2950 = vmatmul.mubr.msk.f32.vlgmr.msra.gmra.mrb[16].mxu1 %vm213_vm2, %v2135_v48 }
0x14b3   :  { %v2033_v52 = vpop.f32.mrb[14].mxu1 }
0x14b4   :  { %v2037_v24 = vadd.f32 %v2033_v52, %v195_v23  ;;  %v2929_v26 = vpop.f32.mrb[15].mxu1 }
0x14b6   :  { %v2531_v27 = vmul.f32 -1.442695, %v2037_v24 }
0x14b8   :  { %3245 = vpow2.f32 %v2531_v27 }
0x14c2   :  { %v3246_v29 = vpop.eup %3245 }
0x14c3   :  { %v2041_v30 = vadd.f32 1.0, %v3246_v29  ;;  %v2204_v31 = vpop.f32.mrb[16].mxu1 }
0x14c4   :  { %v3140_v28 = vadd.f32 %v3428_v3, %v2204_v31  ;;  %v2951_v32 = vpop.f32.mrb[17].mxu1 }
0x14c5   :  { %3247 = vrcp.f32 %v2041_v30 }
0x14c6   :  { %v2535_v34 = vmul.f32 -1.442695, %v3140_v28 }
0x14c8   :  { %3249 = vpow2.f32 %v2535_v34 }
0x14cf   :  { %v3248_v35 = vpop.eup %3247 }
0x14d0   :  { %v2044_v33 = vmul.f32 2.0, %v3248_v35  ;;  %v2046_v43 = vmul.f32 %v3248_v35, %v1783_v12 }
0x14d2   :  { %v3250_v36 = vpop.eup %3249  ;;  %v2532_v37 = vadd.f32 -1.0, %v2044_v33 }
0x14d3   :  { %v2212_v38 = vadd.f32 1.0, %v3250_v36 }
0x14d4   :  { %2048 = vrot.lane.b32.xlu0 %v2532_v37, %s3297_s16 }
0x14d5   :  { %3251 = vrcp.f32 %v2212_v38 }
0x14df   :  { %v3252_v25 = vpop.eup %3251 }
0x14e0   :  { %v2215_v50 = vmul.f32 2.0, %v3252_v25  ;;  %v2217_v54 = vmul.f32 %v3252_v25, %v1954_v17 }
0x14e2   :  { %v2536_v49 = vadd.f32 -1.0, %v2215_v50 }
0x14e4   :  { %2219 = vrot.lane.b32.xlu1 %v2536_v49, %s3297_s16 }
0x1546   :  { %v2049_v39 = vpop.permute.xlu0 %2048 }
0x1547   :  { %v2051_v40 = vmul.f32 %v3248_v35, %v2049_v39 }
0x1549   :  { %2053 = vrot.lane.b32.xlu0 %v2051_v40, %s3298_s19 }
0x1556   :  { %v2220_v41 = vpop.permute.xlu1 %2219 }
0x1557   :  { %v2222_v42 = vmul.f32 %v3252_v25, %v2220_v41 }
0x1559   :  { %2224 = vrot.lane.b32.xlu1 %v2222_v42, %s3298_s19 }
0x15bb   :  { %v2054_v44 = vpop.permute.xlu0 %2053 }
0x15bc   :  { %v2056_v46 = vadd.f32 %v2054_v44, %v2046_v43 }
0x15be   :  { %3253 = vtanh.f32 %v2056_v46 }
0x15c8   :  { %v3254_v53 = vpop.eup %3253 }
0x15c9   :  { %2059 = vrot.lane.b32.xlu0 %v3254_v53, %s3297_s16 }
0x15cb   :  { %v2225_v56 = vpop.permute.xlu1 %2224 }
0x15cc   :  { %v2227_v57 = vadd.f32 %v2225_v56, %v2217_v54 }
0x15ce   :  { %3255 = vtanh.f32 %v2227_v57 }
0x15d8   :  { %v3256_v59 = vpop.eup %3255 }
0x15d9   :  { %2230 = vrot.lane.b32.xlu1 %v3256_v59, %s3297_s16 }
0x163b   :  { %v2060_v60 = vpop.permute.xlu0 %2059 }
0x163c   :  { %v2062_v45 = vmul.f32 %v3248_v35, %v2060_v60 }
0x163e   :  { %2235 = vrot.lane.b32.xlu0 %v2062_v45, %s3298_s19 }
0x164b   :  { %v2231_v61 = vpop.permute.xlu1 %2230 }
0x164c   :  { %v2233_v62 = vmul.f32 %v3252_v25, %v2231_v61 }
0x164e   :  { %2310 = vrot.lane.b32.xlu1 %v2233_v62, %s3298_s19 }
0x16b0   :  { %v2236_v63 = vpop.permute.xlu0 %2235 }
0x16b1   :  { %2411 = vst.msk [vmem:[%s3742_s5] sm:$0xff] %vm213_vm2, %v2236_v63  ;;  %2961 = vmatmul.mubr.msk.f32.vlgmr.msra.gmra.mrb[20].mxu0 %vm213_vm2, %v2236_v63 }
0x16b2   :  { %3130 = vmatpush3.bf16.msra.mxu0 %v3405_v55  ;;  %2971 = vmatprep.mubr.msk.f32.mxu0 %vm3295_vm0, %v3296_v1 }
0x16b3   :  { %3131 = vmatprep.subr.bf16.mxu0 %v3294_v0 }
0x16b6   :  { %3133 = vmatpush3.bf16.msra.mxu0 %v3410_v58  ;;  %v2543_v58 = vld [vmem:[#allocation3 + $0xb0] ss:$0 sm:$0xff] }
0x16c0   :  { %v2311_v2 = vpop.permute.xlu1 %2310 }
0x16c1   :  { %2972 = vmatmul.mubr.msk.f32.vlgmr.msra.gmra.mrb[20].mxu0 %vm213_vm2, %v2311_v2 }
0x1794   :  { %v2380_v4 = vpop.f32.mrb[20].mxu0 }
0x1795   :  { %v3141_v51 = vadd.f32 %v3428_v3, %v2380_v4  ;;  %v2973_v5 = vpop.f32.mrb[21].mxu0 }
0x1797   :  { %v2539_v6 = vmul.f32 -1.442695, %v3141_v51 }
0x1799   :  { %3257 = vpow2.f32 %v2539_v6 }
0x17a3   :  { %v3258_v7 = vpop.eup %3257 }
0x17a4   :  { %v2388_v8 = vadd.f32 1.0, %v3258_v7 }
0x17a6   :  { %3259 = vrcp.f32 %v2388_v8 }
0x17b0   :  { %v3260_v55 = vpop.eup %3259 }
0x17b1   :  { %v2391_v9 = vmul.f32 2.0, %v3260_v55  ;;  %v2393_v11 = vmul.f32 %v3260_v55, %v2227_v57 }
0x17b3   :  { %v2540_v10 = vadd.f32 -1.0, %v2391_v9 }
0x17b5   :  { %2395 = vrot.lane.b32.xlu0 %v2540_v10, %s3297_s16 }
0x1827   :  { %v2396_v0 = vpop.permute.xlu0 %2395 }
0x1828   :  { %v2398_v1 = vmul.f32 %v3260_v55, %v2396_v0 }
0x182a   :  { %2400 = vrot.lane.b32.xlu1 %v2398_v1, %s3298_s19 }
0x182e   :  { %2436 = vrot.lane.b32.xlu1 %v2543_v58, %s3299_s3 }
0x189c   :  { %v2401_v3 = vpop.permute.xlu1 %2400 }
0x189d   :  { %v2403_v13 = vadd.f32 %v2401_v3, %v2393_v11 }
0x189f   :  { %3261 = vtanh.f32 %v2403_v13 }
0x18a0   :  { %v2437_v15 = vpop.permute.xlu1 %2436 }
0x18a9   :  { %v3262_v12 = vpop.eup %3261 }
0x18aa   :  { %2406 = vrot.lane.b32.xlu0 %v3262_v12, %s3297_s16 }
0x191c   :  { %v2407_v14 = vpop.permute.xlu0 %2406 }
0x191d   :  { %v2409_v16 = vmul.f32 %v3260_v55, %v2407_v14 }
0x191f   :  { %v2439_v17 = vmul.f32 %v2437_v15, %v2409_v16 }
0x1921   :  { %2441 = vrot.lane.b32.xlu0 %v2439_v17, %s3298_s19 }
0x1925   :  { %2413 = vrot.lane.b32.xlu0 %v2056_v46, %s3299_s3 }
0x1929   :  { %2418 = vrot.lane.b32.xlu0 %v2409_v16, %s3298_s19 }
0x192d   :  { %2424 = vrot.lane.b32.xlu0 %v2403_v13, %s3299_s3 }
0x1993   :  { %v2442_v18 = vpop.permute.xlu0 %2441 }
0x1994   :  { %v2444_v19 = vsel %vm213_vm2, %v2442_v18, 0.0 }
0x1995   :  { %2445 = vadd.xlane.f32.xlu1 %v2444_v19 }
0x1997   :  { %v2414_v20 = vpop.permute.xlu0 %2413 }
0x1998   :  { %2416 = vst.msk [vmem:[%s3743_s6] sm:$0xff] %vm213_vm2, %v2414_v20 }
0x199b   :  { %v2419_v21 = vpop.permute.xlu0 %2418 }
0x199c   :  { %2541 = vst.msk [vmem:[%s3742_s5 + $0x8] sm:$0xff] %vm213_vm2, %v2419_v21 }
0x199f   :  { %v2425_v47 = vpop.permute.xlu0 %2424 }
0x19a0   :  { %2542 = vst.msk [vmem:[%s3743_s6 + $0x8] sm:$0xff] %vm213_vm2, %v2425_v47 }
0x1a22   :  { %v2446_v48 = vpop.xlane.xlu1 %2445 }
0x1a23   :  { %v2451_v23 = vadd.f32 %v2544_v22, %v2446_v48 }
0x1a25   :  { %v2545_v52 = vmul.f32 -1.442695, %v2451_v23 }
0x1a27   :  { %3263 = vpow2.f32 %v2545_v52 }
0x1a31   :  { %v3264_v24 = vpop.eup %3263 }
0x1a32   :  { %v2455_v26 = vadd.f32 1.0, %v3264_v24 }
0x1a34   :  { %3265 = vrcp.f32 %v2455_v26 }
0x1a3e   :  { %v3266_v27 = vpop.eup %3265 }
0x1a3f   :  { %2459 = vst.msk [vmem:[%s3741_s4] sm:$0xff] %vm2458_vm3, %v3266_v27 }
0x1a40   :  { %2472 = vsyncpa [#allocation4], 1 }

</bundles_post_ra>
